<compile_context>
chip_gen: v7x
topology: tpu7x:2x2x1
jax: 0.10.0
libtpu: 0.0.40
codegen_flags: <defaults>
</compile_context>

<pallas_src>
import math
import functools

import jax
import jax.numpy as jnp
from jax import lax
from jax.experimental import pallas as pl
from jax.experimental.pallas import tpu as pltpu


def clip_layer_kernel(x_ref,
                      ln1_g_ref, ln1_b_ref,
                      wqkv_ref, bqkv_ref,
                      wo_ref, bo_ref,
                      ln2_g_ref, ln2_b_ref,
                      w1_ref, b1_ref,
                      w2_ref, b2_ref,
                      o_ref,
                      *, n_head):
    x = x_ref[0].astype(jnp.float32)          # (S, E) -- one batch element / grid step
    S, E = x.shape
    Dh = E // n_head
    eps = jnp.float32(1e-5)

    # ---------------- LayerNorm 1 (f32) ----------------
    mu = jnp.mean(x, axis=-1, keepdims=True)
    var = jnp.mean((x - mu) ** 2, axis=-1, keepdims=True)
    xn = (x - mu) * lax.rsqrt(var + eps)
    xn = xn * ln1_g_ref[...] + ln1_b_ref[...]

    # ---------------- causal self-attention ----------------
    # QKV projection: bf16 operands on the MXU, f32 accumulation.
    qkv = jnp.dot(xn.astype(jnp.bfloat16), wqkv_ref[...],
                  preferred_element_type=jnp.float32) + bqkv_ref[...]

    scale = jnp.float32(1.0 / math.sqrt(Dh))
    q_bf = (qkv[:, 0:E] * scale).astype(jnp.bfloat16)   # fold scale into q (once)
    k_bf = qkv[:, E:2 * E].astype(jnp.bfloat16)
    v_bf = qkv[:, 2 * E:3 * E].astype(jnp.bfloat16)

    row = lax.broadcasted_iota(jnp.int32, (S, S), 0)
    col = lax.broadcasted_iota(jnp.int32, (S, S), 1)
    causal = col > row                  # upper triangle (diag=1) masked, like torch.triu
    neg_big = jnp.float32(-1e30)        # finite: safe with low-precision scores

    # Per-head attention; head outputs are concatenated and projected with ONE
    # K=E matmul (MXU-friendly) instead of n_head K=Dh matmuls.
    head_outs = []
    for h in range(n_head):             # n_head is small & static; fully unrolled
        sl = slice(h * Dh, (h + 1) * Dh)
        qh = q_bf[:, sl]
        kh = k_bf[:, sl]
        vh = v_bf[:, sl]
        # scores: contract last dims directly (no kh.T relayout)
        s = lax.dot_general(qh, kh,
                            dimension_numbers=(((1,), (1,)), ((), ())),
                            preferred_element_type=jnp.float32)
        s = jnp.where(causal, neg_big, s)
        s = s - jnp.max(s, axis=-1, keepdims=True)
        p = jnp.exp(s)
        inv = pl.reciprocal(jnp.sum(p, axis=-1, keepdims=True), approx=True)
        p = p * inv                                                   # EUP divide
        oh = jnp.dot(p.astype(jnp.bfloat16), vh,
                     preferred_element_type=jnp.float32)              # (S, Dh) f32
        head_outs.append(oh)

    concat = jnp.concatenate(head_outs, axis=-1)                      # (S, E) f32
    attn = jnp.dot(concat.astype(jnp.bfloat16), wo_ref[...],
                   preferred_element_type=jnp.float32) + bo_ref[...]

    x1 = x + attn                       # first residual (f32)

    # ---------------- LayerNorm 2 (f32) ----------------
    mu2 = jnp.mean(x1, axis=-1, keepdims=True)
    var2 = jnp.mean((x1 - mu2) ** 2, axis=-1, keepdims=True)
    x2 = (x1 - mu2) * lax.rsqrt(var2 + eps)
    x2 = x2 * ln2_g_ref[...] + ln2_b_ref[...]

    # ---------------- MLP with QuickGELU ----------------
    h1 = jnp.dot(x2.astype(jnp.bfloat16), w1_ref[...],
                 preferred_element_type=jnp.float32) + b1_ref[...]
    h1 = h1 * jax.nn.sigmoid(jnp.float32(1.702) * h1)                 # f32 QuickGELU
    h2 = jnp.dot(h1.astype(jnp.bfloat16), w2_ref[...],
                 preferred_element_type=jnp.float32) + b2_ref[...]

    o_ref[0] = (h2 + x1).astype(o_ref.dtype)   # second residual


def clip_layer(x, params, n_head):
    """x: (B, S, E) float32. params: dict of f32 weights (see init_params)."""
    B, S, E = x.shape
    assert S % 8 == 0, "pad S to a multiple of 8 (sublane) at the caller"
    assert E % 128 == 0, "pad E to a multiple of 128 (lane) at the caller"
    assert E % n_head == 0

    f32, bf16 = jnp.float32, jnp.bfloat16
    # Matmul weights in bf16 (halves VMEM/HBM bytes, MXU-friendly); biases and
    # LN params stay f32 and are reshaped to lane-dense (1, N) slabs.
    prep = {
        "ln1_g": params["ln1_g"].reshape(1, E).astype(f32),
        "ln1_b": params["ln1_b"].reshape(1, E).astype(f32),
        "wqkv":  params["wqkv"].astype(bf16),
        "bqkv":  params["bqkv"].reshape(1, 3 * E).astype(f32),
        "wo":    params["wo"].astype(bf16),
        "bo":    params["bo"].reshape(1, E).astype(f32),
        "ln2_g": params["ln2_g"].reshape(1, E).astype(f32),
        "ln2_b": params["ln2_b"].reshape(1, E).astype(f32),
        "w1":    params["w1"].astype(bf16),
        "b1":    params["b1"].reshape(1, 4 * E).astype(f32),
        "w2":    params["w2"].astype(bf16),
        "b2":    params["b2"].reshape(1, E).astype(f32),
    }
    weight_order = ["ln1_g", "ln1_b", "wqkv", "bqkv", "wo", "bo",
                    "ln2_g", "ln2_b", "w1", "b1", "w2", "b2"]
    weights = [prep[k] for k in weight_order]

    def full_spec(shape):
        nd = len(shape)
        return pl.BlockSpec(shape, lambda b, _nd=nd: (0,) * _nd)

    in_specs = [pl.BlockSpec((1, S, E), lambda b: (b, 0, 0))]
    in_specs += [full_spec(w.shape) for w in weights]

    kernel = functools.partial(clip_layer_kernel, n_head=n_head)
    return pl.pallas_call(
        kernel,
        out_shape=jax.ShapeDtypeStruct((B, S, E), x.dtype),
        grid=(B,),
        in_specs=in_specs,
        out_specs=pl.BlockSpec((1, S, E), lambda b: (b, 0, 0)),
        compiler_params=pltpu.CompilerParams(
            dimension_semantics=("parallel",),
            vmem_limit_bytes=64 * 1024 * 1024),
    )(x, *weights)


def init_params(key, emd_size):
    """Deterministic synthetic parameters (shapes match nn.Module __init__)."""
    E = emd_size
    keys = jax.random.split(key, 8)
    s = 0.05
    return {
        # LayerNorm 1
        "ln1_g": jnp.ones((E,), jnp.float32),
        "ln1_b": jnp.zeros((E,), jnp.float32),
        # SelfAttention: in_proj (E -> 3E), out_proj (E -> E)
        "wqkv": s * jax.random.normal(keys[0], (E, 3 * E), jnp.float32),
        "bqkv": s * jax.random.normal(keys[1], (3 * E,), jnp.float32),
        "wo":   s * jax.random.normal(keys[2], (E, E), jnp.float32),
        "bo":   s * jax.random.normal(keys[3], (E,), jnp.float32),
        # LayerNorm 2
        "ln2_g": jnp.ones((E,), jnp.float32),
        "ln2_b": jnp.zeros((E,), jnp.float32),
        # MLP: Linear(E, 4E), Linear(4E, E)
        "w1": s * jax.random.normal(keys[4], (E, 4 * E), jnp.float32),
        "b1": s * jax.random.normal(keys[5], (4 * E,), jnp.float32),
        "w2": s * jax.random.normal(keys[6], (4 * E, E), jnp.float32),
        "b2": s * jax.random.normal(keys[7], (E,), jnp.float32),
    }


if __name__ == "__main__":
    # lane-dense demo shapes: S multiple of 8, E multiple of 128 (Dh = 32)
    B, S, E, H = 2, 8, 128, 4
    key = jax.random.PRNGKey(0)
    kx, kp = jax.random.split(key)
    x = jax.random.normal(kx, (B, S, E), jnp.float32)
    params = init_params(kp, E)

    out = clip_layer(x, params, n_head=H)
    out = jax.block_until_ready(out)

    assert out.shape == (B, S, E)
    assert bool(jnp.all(jnp.isfinite(out)))
    print("KERNEL_OK")
</pallas_src>

<mosaic_0001>
module attributes {stable_mosaic.version = 11 : i64} {
  func.func @clip_layer_kernel(%arg0: i32, %arg1: memref<1x8x128xf32, #tpu.memory_space<vmem>>, %arg2: memref<1x128xf32, #tpu.memory_space<vmem>>, %arg3: memref<1x128xf32, #tpu.memory_space<vmem>>, %arg4: memref<128x384xbf16, #tpu.memory_space<vmem>>, %arg5: memref<1x384xf32, #tpu.memory_space<vmem>>, %arg6: memref<128x128xbf16, #tpu.memory_space<vmem>>, %arg7: memref<1x128xf32, #tpu.memory_space<vmem>>, %arg8: memref<1x128xf32, #tpu.memory_space<vmem>>, %arg9: memref<1x128xf32, #tpu.memory_space<vmem>>, %arg10: memref<128x512xbf16, #tpu.memory_space<vmem>>, %arg11: memref<1x512xf32, #tpu.memory_space<vmem>>, %arg12: memref<512x128xbf16, #tpu.memory_space<vmem>>, %arg13: memref<1x128xf32, #tpu.memory_space<vmem>>, %arg14: memref<1x8x128xf32, #tpu.memory_space<vmem>>) attributes {dimension_semantics = [#tpu.dimension_semantics<parallel>], iteration_bounds = array<i64: 2>, scalar_prefetch = 0 : i64, scratch_operands = 0 : i64, tpu.core_type = #tpu.core_type<tc>, window_params = [{transform_indices = @transform_0, window_bounds = array<i64: 1, 8, 128>}, {pipeline_mode = #tpu.pipeline_mode<synchronous>, transform_indices = @transform_1, window_bounds = array<i64: 1, 128>}, {pipeline_mode = #tpu.pipeline_mode<synchronous>, transform_indices = @transform_2, window_bounds = array<i64: 1, 128>}, {pipeline_mode = #tpu.pipeline_mode<synchronous>, transform_indices = @transform_3, window_bounds = array<i64: 128, 384>}, {pipeline_mode = #tpu.pipeline_mode<synchronous>, transform_indices = @transform_4, window_bounds = array<i64: 1, 384>}, {pipeline_mode = #tpu.pipeline_mode<synchronous>, transform_indices = @transform_5, window_bounds = array<i64: 128, 128>}, {pipeline_mode = #tpu.pipeline_mode<synchronous>, transform_indices = @transform_6, window_bounds = array<i64: 1, 128>}, {pipeline_mode = #tpu.pipeline_mode<synchronous>, transform_indices = @transform_7, window_bounds = array<i64: 1, 128>}, {pipeline_mode = #tpu.pipeline_mode<synchronous>, transform_indices = @transform_8, window_bounds = array<i64: 1, 128>}, {pipeline_mode = #tpu.pipeline_mode<synchronous>, transform_indices = @transform_9, window_bounds = array<i64: 128, 512>}, {pipeline_mode = #tpu.pipeline_mode<synchronous>, transform_indices = @transform_10, window_bounds = array<i64: 1, 512>}, {pipeline_mode = #tpu.pipeline_mode<synchronous>, transform_indices = @transform_11, window_bounds = array<i64: 512, 128>}, {pipeline_mode = #tpu.pipeline_mode<synchronous>, transform_indices = @transform_12, window_bounds = array<i64: 1, 128>}, {transform_indices = @transform_13, window_bounds = array<i64: 1, 8, 128>}]} {
    %c0 = arith.constant 0 : index
    %c0_0 = arith.constant 0 : index
    %c0_1 = arith.constant 0 : index
    %0 = vector.load %arg1[%c0, %c0_0, %c0_1] : memref<1x8x128xf32, #tpu.memory_space<vmem>>, vector<1x8x128xf32>
    %1 = vector.shape_cast %0 : vector<1x8x128xf32> to vector<8x128xf32>
    %cst = arith.constant dense<0.000000e+00> : vector<8xf32>
    %2 = vector.multi_reduction <add>, %1, %cst [1] : vector<8x128xf32> to vector<8xf32>
    %3 = vector.shape_cast %2 : vector<8xf32> to vector<8x1xf32>
    %cst_2 = arith.constant 1.280000e+02 : f32
    %4 = vector.broadcast %cst_2 : f32 to vector<8x1xf32>
    %5 = arith.divf %3, %4 : vector<8x1xf32>
    %6 = vector.broadcast %5 : vector<8x1xf32> to vector<8x128xf32>
    %7 = arith.subf %1, %6 : vector<8x128xf32>
    %8 = arith.mulf %7, %7 : vector<8x128xf32>
    %cst_3 = arith.constant dense<0.000000e+00> : vector<8xf32>
    %9 = vector.multi_reduction <add>, %8, %cst_3 [1] : vector<8x128xf32> to vector<8xf32>
    %10 = vector.shape_cast %9 : vector<8xf32> to vector<8x1xf32>
    %cst_4 = arith.constant 1.280000e+02 : f32
    %11 = vector.broadcast %cst_4 : f32 to vector<8x1xf32>
    %12 = arith.divf %10, %11 : vector<8x1xf32>
    %13 = vector.broadcast %5 : vector<8x1xf32> to vector<8x128xf32>
    %14 = arith.subf %1, %13 : vector<8x128xf32>
    %cst_5 = arith.constant 9.99999974E-6 : f32
    %15 = vector.broadcast %cst_5 : f32 to vector<8x1xf32>
    %16 = arith.addf %12, %15 : vector<8x1xf32>
    %17 = math.rsqrt %16 : vector<8x1xf32>
    %18 = vector.broadcast %17 : vector<8x1xf32> to vector<8x128xf32>
    %19 = arith.mulf %14, %18 : vector<8x128xf32>
    %c0_6 = arith.constant 0 : index
    %c0_7 = arith.constant 0 : index
    %20 = vector.load %arg2[%c0_6, %c0_7] : memref<1x128xf32, #tpu.memory_space<vmem>>, vector<1x128xf32>
    %21 = vector.broadcast %20 : vector<1x128xf32> to vector<8x128xf32>
    %22 = arith.mulf %19, %21 : vector<8x128xf32>
    %c0_8 = arith.constant 0 : index
    %c0_9 = arith.constant 0 : index
    %23 = vector.load %arg3[%c0_8, %c0_9] : memref<1x128xf32, #tpu.memory_space<vmem>>, vector<1x128xf32>
    %24 = vector.broadcast %23 : vector<1x128xf32> to vector<8x128xf32>
    %25 = arith.addf %22, %24 : vector<8x128xf32>
    %26 = arith.truncf %25 : vector<8x128xf32> to vector<8x128xbf16>
    %c0_10 = arith.constant 0 : index
    %c0_11 = arith.constant 0 : index
    %27 = vector.load %arg4[%c0_10, %c0_11] : memref<128x384xbf16, #tpu.memory_space<vmem>>, vector<128x384xbf16>
    %cst_12 = arith.constant dense<0.000000e+00> : vector<8x384xf32>
    %28 = tpu.matmul %26, %27, %cst_12 {dimension_numbers = #tpu.dot_dimension_numbers<[1], [0], [0], [1], [0, 0, 1, 1], [], []>} : vector<8x128xbf16>, vector<128x384xbf16>, vector<8x384xf32> -> vector<8x384xf32>
    %c0_13 = arith.constant 0 : index
    %c0_14 = arith.constant 0 : index
    %29 = vector.load %arg5[%c0_13, %c0_14] : memref<1x384xf32, #tpu.memory_space<vmem>>, vector<1x384xf32>
    %30 = vector.broadcast %29 : vector<1x384xf32> to vector<8x384xf32>
    %31 = arith.addf %28, %30 : vector<8x384xf32>
    %32 = vector.extract_strided_slice %31 {offsets = [0, 0], sizes = [8, 128], strides = [1, 1]} : vector<8x384xf32> to vector<8x128xf32>
    %cst_15 = arith.constant 0.176776692 : f32
    %33 = vector.broadcast %cst_15 : f32 to vector<8x128xf32>
    %34 = arith.mulf %32, %33 : vector<8x128xf32>
    %35 = arith.truncf %34 : vector<8x128xf32> to vector<8x128xbf16>
    %36 = vector.extract_strided_slice %31 {offsets = [0, 128], sizes = [8, 128], strides = [1, 1]} : vector<8x384xf32> to vector<8x128xf32>
    %37 = arith.truncf %36 : vector<8x128xf32> to vector<8x128xbf16>
    %38 = vector.extract_strided_slice %31 {offsets = [0, 256], sizes = [8, 128], strides = [1, 1]} : vector<8x384xf32> to vector<8x128xf32>
    %39 = arith.truncf %38 : vector<8x128xf32> to vector<8x128xbf16>
    %40 = tpu.iota {dimensions = array<i32: 0>} : vector<8x8xi32>
    %41 = tpu.iota {dimensions = array<i32: 1>} : vector<8x8xi32>
    %42 = arith.cmpi sgt, %41, %40 : vector<8x8xi32>
    %43 = vector.extract_strided_slice %35 {offsets = [0, 0], sizes = [8, 32], strides = [1, 1]} : vector<8x128xbf16> to vector<8x32xbf16>
    %44 = vector.extract_strided_slice %37 {offsets = [0, 0], sizes = [8, 32], strides = [1, 1]} : vector<8x128xbf16> to vector<8x32xbf16>
    %45 = vector.extract_strided_slice %39 {offsets = [0, 0], sizes = [8, 32], strides = [1, 1]} : vector<8x128xbf16> to vector<8x32xbf16>
    %cst_16 = arith.constant dense<0.000000e+00> : vector<8x8xf32>
    %46 = tpu.matmul %43, %44, %cst_16 {dimension_numbers = #tpu.dot_dimension_numbers<[1], [1], [0], [0], [0, 0, 1, 0], [], []>} : vector<8x32xbf16>, vector<8x32xbf16>, vector<8x8xf32> -> vector<8x8xf32>
    %cst_17 = arith.constant -1.000000e+30 : f32
    %47 = vector.broadcast %cst_17 : f32 to vector<8x8xf32>
    %48 = arith.select %42, %47, %46 : vector<8x8xi1>, vector<8x8xf32>
    %cst_18 = arith.constant dense<0xFF800000> : vector<8xf32>
    %49 = vector.multi_reduction <maximumf>, %48, %cst_18 [1] : vector<8x8xf32> to vector<8xf32>
    %50 = vector.shape_cast %49 : vector<8xf32> to vector<8x1xf32>
    %51 = vector.broadcast %50 : vector<8x1xf32> to vector<8x8xf32>
    %52 = arith.subf %48, %51 : vector<8x8xf32>
    %53 = math.exp %52 : vector<8x8xf32>
    %cst_19 = arith.constant dense<0.000000e+00> : vector<8xf32>
    %54 = vector.multi_reduction <add>, %53, %cst_19 [1] : vector<8x8xf32> to vector<8xf32>
    %55 = vector.shape_cast %54 : vector<8xf32> to vector<8x1xf32>
    %56 = tpu.reciprocal %55 {approx = true} : vector<8x1xf32> -> vector<8x1xf32>
    %57 = vector.broadcast %56 : vector<8x1xf32> to vector<8x8xf32>
    %58 = arith.mulf %53, %57 : vector<8x8xf32>
    %59 = arith.truncf %58 : vector<8x8xf32> to vector<8x8xbf16>
    %cst_20 = arith.constant dense<0.000000e+00> : vector<8x32xf32>
    %60 = tpu.matmul %59, %45, %cst_20 {dimension_numbers = #tpu.dot_dimension_numbers<[1], [0], [0], [1], [0, 0, 1, 1], [], []>} : vector<8x8xbf16>, vector<8x32xbf16>, vector<8x32xf32> -> vector<8x32xf32>
    %61 = vector.extract_strided_slice %35 {offsets = [0, 32], sizes = [8, 32], strides = [1, 1]} : vector<8x128xbf16> to vector<8x32xbf16>
    %62 = vector.extract_strided_slice %37 {offsets = [0, 32], sizes = [8, 32], strides = [1, 1]} : vector<8x128xbf16> to vector<8x32xbf16>
    %63 = vector.extract_strided_slice %39 {offsets = [0, 32], sizes = [8, 32], strides = [1, 1]} : vector<8x128xbf16> to vector<8x32xbf16>
    %cst_21 = arith.constant dense<0.000000e+00> : vector<8x8xf32>
    %64 = tpu.matmul %61, %62, %cst_21 {dimension_numbers = #tpu.dot_dimension_numbers<[1], [1], [0], [0], [0, 0, 1, 0], [], []>} : vector<8x32xbf16>, vector<8x32xbf16>, vector<8x8xf32> -> vector<8x8xf32>
    %cst_22 = arith.constant -1.000000e+30 : f32
    %65 = vector.broadcast %cst_22 : f32 to vector<8x8xf32>
    %66 = arith.select %42, %65, %64 : vector<8x8xi1>, vector<8x8xf32>
    %cst_23 = arith.constant dense<0xFF800000> : vector<8xf32>
    %67 = vector.multi_reduction <maximumf>, %66, %cst_23 [1] : vector<8x8xf32> to vector<8xf32>
    %68 = vector.shape_cast %67 : vector<8xf32> to vector<8x1xf32>
    %69 = vector.broadcast %68 : vector<8x1xf32> to vector<8x8xf32>
    %70 = arith.subf %66, %69 : vector<8x8xf32>
    %71 = math.exp %70 : vector<8x8xf32>
    %cst_24 = arith.constant dense<0.000000e+00> : vector<8xf32>
    %72 = vector.multi_reduction <add>, %71, %cst_24 [1] : vector<8x8xf32> to vector<8xf32>
    %73 = vector.shape_cast %72 : vector<8xf32> to vector<8x1xf32>
    %74 = tpu.reciprocal %73 {approx = true} : vector<8x1xf32> -> vector<8x1xf32>
    %75 = vector.broadcast %74 : vector<8x1xf32> to vector<8x8xf32>
    %76 = arith.mulf %71, %75 : vector<8x8xf32>
    %77 = arith.truncf %76 : vector<8x8xf32> to vector<8x8xbf16>
    %cst_25 = arith.constant dense<0.000000e+00> : vector<8x32xf32>
    %78 = tpu.matmul %77, %63, %cst_25 {dimension_numbers = #tpu.dot_dimension_numbers<[1], [0], [0], [1], [0, 0, 1, 1], [], []>} : vector<8x8xbf16>, vector<8x32xbf16>, vector<8x32xf32> -> vector<8x32xf32>
    %79 = vector.extract_strided_slice %35 {offsets = [0, 64], sizes = [8, 32], strides = [1, 1]} : vector<8x128xbf16> to vector<8x32xbf16>
    %80 = vector.extract_strided_slice %37 {offsets = [0, 64], sizes = [8, 32], strides = [1, 1]} : vector<8x128xbf16> to vector<8x32xbf16>
    %81 = vector.extract_strided_slice %39 {offsets = [0, 64], sizes = [8, 32], strides = [1, 1]} : vector<8x128xbf16> to vector<8x32xbf16>
    %cst_26 = arith.constant dense<0.000000e+00> : vector<8x8xf32>
    %82 = tpu.matmul %79, %80, %cst_26 {dimension_numbers = #tpu.dot_dimension_numbers<[1], [1], [0], [0], [0, 0, 1, 0], [], []>} : vector<8x32xbf16>, vector<8x32xbf16>, vector<8x8xf32> -> vector<8x8xf32>
    %cst_27 = arith.constant -1.000000e+30 : f32
    %83 = vector.broadcast %cst_27 : f32 to vector<8x8xf32>
    %84 = arith.select %42, %83, %82 : vector<8x8xi1>, vector<8x8xf32>
    %cst_28 = arith.constant dense<0xFF800000> : vector<8xf32>
    %85 = vector.multi_reduction <maximumf>, %84, %cst_28 [1] : vector<8x8xf32> to vector<8xf32>
    %86 = vector.shape_cast %85 : vector<8xf32> to vector<8x1xf32>
    %87 = vector.broadcast %86 : vector<8x1xf32> to vector<8x8xf32>
    %88 = arith.subf %84, %87 : vector<8x8xf32>
    %89 = math.exp %88 : vector<8x8xf32>
    %cst_29 = arith.constant dense<0.000000e+00> : vector<8xf32>
    %90 = vector.multi_reduction <add>, %89, %cst_29 [1] : vector<8x8xf32> to vector<8xf32>
    %91 = vector.shape_cast %90 : vector<8xf32> to vector<8x1xf32>
    %92 = tpu.reciprocal %91 {approx = true} : vector<8x1xf32> -> vector<8x1xf32>
    %93 = vector.broadcast %92 : vector<8x1xf32> to vector<8x8xf32>
    %94 = arith.mulf %89, %93 : vector<8x8xf32>
    %95 = arith.truncf %94 : vector<8x8xf32> to vector<8x8xbf16>
    %cst_30 = arith.constant dense<0.000000e+00> : vector<8x32xf32>
    %96 = tpu.matmul %95, %81, %cst_30 {dimension_numbers = #tpu.dot_dimension_numbers<[1], [0], [0], [1], [0, 0, 1, 1], [], []>} : vector<8x8xbf16>, vector<8x32xbf16>, vector<8x32xf32> -> vector<8x32xf32>
    %97 = vector.extract_strided_slice %35 {offsets = [0, 96], sizes = [8, 32], strides = [1, 1]} : vector<8x128xbf16> to vector<8x32xbf16>
    %98 = vector.extract_strided_slice %37 {offsets = [0, 96], sizes = [8, 32], strides = [1, 1]} : vector<8x128xbf16> to vector<8x32xbf16>
    %99 = vector.extract_strided_slice %39 {offsets = [0, 96], sizes = [8, 32], strides = [1, 1]} : vector<8x128xbf16> to vector<8x32xbf16>
    %cst_31 = arith.constant dense<0.000000e+00> : vector<8x8xf32>
    %100 = tpu.matmul %97, %98, %cst_31 {dimension_numbers = #tpu.dot_dimension_numbers<[1], [1], [0], [0], [0, 0, 1, 0], [], []>} : vector<8x32xbf16>, vector<8x32xbf16>, vector<8x8xf32> -> vector<8x8xf32>
    %cst_32 = arith.constant -1.000000e+30 : f32
    %101 = vector.broadcast %cst_32 : f32 to vector<8x8xf32>
    %102 = arith.select %42, %101, %100 : vector<8x8xi1>, vector<8x8xf32>
    %cst_33 = arith.constant dense<0xFF800000> : vector<8xf32>
    %103 = vector.multi_reduction <maximumf>, %102, %cst_33 [1] : vector<8x8xf32> to vector<8xf32>
    %104 = vector.shape_cast %103 : vector<8xf32> to vector<8x1xf32>
    %105 = vector.broadcast %104 : vector<8x1xf32> to vector<8x8xf32>
    %106 = arith.subf %102, %105 : vector<8x8xf32>
    %107 = math.exp %106 : vector<8x8xf32>
    %cst_34 = arith.constant dense<0.000000e+00> : vector<8xf32>
    %108 = vector.multi_reduction <add>, %107, %cst_34 [1] : vector<8x8xf32> to vector<8xf32>
    %109 = vector.shape_cast %108 : vector<8xf32> to vector<8x1xf32>
    %110 = tpu.reciprocal %109 {approx = true} : vector<8x1xf32> -> vector<8x1xf32>
    %111 = vector.broadcast %110 : vector<8x1xf32> to vector<8x8xf32>
    %112 = arith.mulf %107, %111 : vector<8x8xf32>
    %113 = arith.truncf %112 : vector<8x8xf32> to vector<8x8xbf16>
    %cst_35 = arith.constant dense<0.000000e+00> : vector<8x32xf32>
    %114 = tpu.matmul %113, %99, %cst_35 {dimension_numbers = #tpu.dot_dimension_numbers<[1], [0], [0], [1], [0, 0, 1, 1], [], []>} : vector<8x8xbf16>, vector<8x32xbf16>, vector<8x32xf32> -> vector<8x32xf32>
    %115 = tpu.concatenate %60, %78, %96, %114 in 1 : vector<8x32xf32>, vector<8x32xf32>, vector<8x32xf32>, vector<8x32xf32> -> vector<8x128xf32>
    %116 = arith.truncf %115 : vector<8x128xf32> to vector<8x128xbf16>
    %c0_36 = arith.constant 0 : index
    %c0_37 = arith.constant 0 : index
    %117 = vector.load %arg6[%c0_36, %c0_37] : memref<128x128xbf16, #tpu.memory_space<vmem>>, vector<128x128xbf16>
    %cst_38 = arith.constant dense<0.000000e+00> : vector<8x128xf32>
    %118 = tpu.matmul %116, %117, %cst_38 {dimension_numbers = #tpu.dot_dimension_numbers<[1], [0], [0], [1], [0, 0, 1, 1], [], []>} : vector<8x128xbf16>, vector<128x128xbf16>, vector<8x128xf32> -> vector<8x128xf32>
    %c0_39 = arith.constant 0 : index
    %c0_40 = arith.constant 0 : index
    %119 = vector.load %arg7[%c0_39, %c0_40] : memref<1x128xf32, #tpu.memory_space<vmem>>, vector<1x128xf32>
    %120 = vector.broadcast %119 : vector<1x128xf32> to vector<8x128xf32>
    %121 = arith.addf %118, %120 : vector<8x128xf32>
    %122 = arith.addf %1, %121 : vector<8x128xf32>
    %cst_41 = arith.constant dense<0.000000e+00> : vector<8xf32>
    %123 = vector.multi_reduction <add>, %122, %cst_41 [1] : vector<8x128xf32> to vector<8xf32>
    %124 = vector.shape_cast %123 : vector<8xf32> to vector<8x1xf32>
    %cst_42 = arith.constant 1.280000e+02 : f32
    %125 = vector.broadcast %cst_42 : f32 to vector<8x1xf32>
    %126 = arith.divf %124, %125 : vector<8x1xf32>
    %127 = vector.broadcast %126 : vector<8x1xf32> to vector<8x128xf32>
    %128 = arith.subf %122, %127 : vector<8x128xf32>
    %129 = arith.mulf %128, %128 : vector<8x128xf32>
    %cst_43 = arith.constant dense<0.000000e+00> : vector<8xf32>
    %130 = vector.multi_reduction <add>, %129, %cst_43 [1] : vector<8x128xf32> to vector<8xf32>
    %131 = vector.shape_cast %130 : vector<8xf32> to vector<8x1xf32>
    %cst_44 = arith.constant 1.280000e+02 : f32
    %132 = vector.broadcast %cst_44 : f32 to vector<8x1xf32>
    %133 = arith.divf %131, %132 : vector<8x1xf32>
    %134 = vector.broadcast %126 : vector<8x1xf32> to vector<8x128xf32>
    %135 = arith.subf %122, %134 : vector<8x128xf32>
    %cst_45 = arith.constant 9.99999974E-6 : f32
    %136 = vector.broadcast %cst_45 : f32 to vector<8x1xf32>
    %137 = arith.addf %133, %136 : vector<8x1xf32>
    %138 = math.rsqrt %137 : vector<8x1xf32>
    %139 = vector.broadcast %138 : vector<8x1xf32> to vector<8x128xf32>
    %140 = arith.mulf %135, %139 : vector<8x128xf32>
    %c0_46 = arith.constant 0 : index
    %c0_47 = arith.constant 0 : index
    %141 = vector.load %arg8[%c0_46, %c0_47] : memref<1x128xf32, #tpu.memory_space<vmem>>, vector<1x128xf32>
    %142 = vector.broadcast %141 : vector<1x128xf32> to vector<8x128xf32>
    %143 = arith.mulf %140, %142 : vector<8x128xf32>
    %c0_48 = arith.constant 0 : index
    %c0_49 = arith.constant 0 : index
    %144 = vector.load %arg9[%c0_48, %c0_49] : memref<1x128xf32, #tpu.memory_space<vmem>>, vector<1x128xf32>
    %145 = vector.broadcast %144 : vector<1x128xf32> to vector<8x128xf32>
    %146 = arith.addf %143, %145 : vector<8x128xf32>
    %147 = arith.truncf %146 : vector<8x128xf32> to vector<8x128xbf16>
    %c0_50 = arith.constant 0 : index
    %c0_51 = arith.constant 0 : index
    %148 = vector.load %arg10[%c0_50, %c0_51] : memref<128x512xbf16, #tpu.memory_space<vmem>>, vector<128x512xbf16>
    %cst_52 = arith.constant dense<0.000000e+00> : vector<8x512xf32>
    %149 = tpu.matmul %147, %148, %cst_52 {dimension_numbers = #tpu.dot_dimension_numbers<[1], [0], [0], [1], [0, 0, 1, 1], [], []>} : vector<8x128xbf16>, vector<128x512xbf16>, vector<8x512xf32> -> vector<8x512xf32>
    %c0_53 = arith.constant 0 : index
    %c0_54 = arith.constant 0 : index
    %150 = vector.load %arg11[%c0_53, %c0_54] : memref<1x512xf32, #tpu.memory_space<vmem>>, vector<1x512xf32>
    %151 = vector.broadcast %150 : vector<1x512xf32> to vector<8x512xf32>
    %152 = arith.addf %149, %151 : vector<8x512xf32>
    %cst_55 = arith.constant 1.702000e+00 : f32
    %153 = vector.broadcast %cst_55 : f32 to vector<8x512xf32>
    %154 = arith.mulf %153, %152 : vector<8x512xf32>
    %155 = arith.negf %154 : vector<8x512xf32>
    %156 = math.exp %155 : vector<8x512xf32>
    %cst_56 = arith.constant 1.000000e+00 : f32
    %157 = vector.broadcast %cst_56 : f32 to vector<8x512xf32>
    %158 = arith.addf %157, %156 : vector<8x512xf32>
    %159 = arith.divf %157, %158 : vector<8x512xf32>
    %160 = arith.mulf %152, %159 : vector<8x512xf32>
    %161 = arith.truncf %160 : vector<8x512xf32> to vector<8x512xbf16>
    %c0_57 = arith.constant 0 : index
    %c0_58 = arith.constant 0 : index
    %162 = vector.load %arg12[%c0_57, %c0_58] : memref<512x128xbf16, #tpu.memory_space<vmem>>, vector<512x128xbf16>
    %cst_59 = arith.constant dense<0.000000e+00> : vector<8x128xf32>
    %163 = tpu.matmul %161, %162, %cst_59 {dimension_numbers = #tpu.dot_dimension_numbers<[1], [0], [0], [1], [0, 0, 1, 1], [], []>} : vector<8x512xbf16>, vector<512x128xbf16>, vector<8x128xf32> -> vector<8x128xf32>
    %c0_60 = arith.constant 0 : index
    %c0_61 = arith.constant 0 : index
    %164 = vector.load %arg13[%c0_60, %c0_61] : memref<1x128xf32, #tpu.memory_space<vmem>>, vector<1x128xf32>
    %165 = vector.broadcast %164 : vector<1x128xf32> to vector<8x128xf32>
    %166 = arith.addf %163, %165 : vector<8x128xf32>
    %167 = arith.addf %166, %122 : vector<8x128xf32>
    %c0_62 = arith.constant 0 : index
    %c0_63 = arith.constant 0 : index
    %c0_64 = arith.constant 0 : index
    %168 = vector.load %arg14[%c0_62, %c0_63, %c0_64] : memref<1x8x128xf32, #tpu.memory_space<vmem>>, vector<1x8x128xf32>
    %169 = vector.shape_cast %168 : vector<1x8x128xf32> to vector<8x128xf32>
    %170 = vector.shape_cast %167 : vector<8x128xf32> to vector<1x8x128xf32>
    tpu.vector_store %arg14[%c0_62, %c0_63, %c0_64], %170 {strides = array<i32>} : memref<1x8x128xf32, #tpu.memory_space<vmem>>, vector<1x8x128xf32>,
    return
  }
  func.func @transform_0(%arg0: i32) -> (i32, i32, i32) {
    %c0_i32 = arith.constant 0 : i32
    %c0_i32_0 = arith.constant 0 : i32
    %c0_i32_1 = arith.constant 0 : i32
    return %arg0, %c0_i32, %c0_i32_0 : i32, i32, i32
  }
  func.func @transform_1(%arg0: i32) -> (i32, i32) {
    %c0_i32 = arith.constant 0 : i32
    %c0_i32_0 = arith.constant 0 : i32
    %c0_i32_1 = arith.constant 0 : i32
    return %c0_i32, %c0_i32_0 : i32, i32
  }
  func.func @transform_2(%arg0: i32) -> (i32, i32) {
    %c0_i32 = arith.constant 0 : i32
    %c0_i32_0 = arith.constant 0 : i32
    %c0_i32_1 = arith.constant 0 : i32
    return %c0_i32, %c0_i32_0 : i32, i32
  }
  func.func @transform_3(%arg0: i32) -> (i32, i32) {
    %c0_i32 = arith.constant 0 : i32
    %c0_i32_0 = arith.constant 0 : i32
    %c0_i32_1 = arith.constant 0 : i32
    return %c0_i32, %c0_i32_0 : i32, i32
  }
  func.func @transform_4(%arg0: i32) -> (i32, i32) {
    %c0_i32 = arith.constant 0 : i32
    %c0_i32_0 = arith.constant 0 : i32
    %c0_i32_1 = arith.constant 0 : i32
    return %c0_i32, %c0_i32_0 : i32, i32
  }
  func.func @transform_5(%arg0: i32) -> (i32, i32) {
    %c0_i32 = arith.constant 0 : i32
    %c0_i32_0 = arith.constant 0 : i32
    %c0_i32_1 = arith.constant 0 : i32
    return %c0_i32, %c0_i32_0 : i32, i32
  }
  func.func @transform_6(%arg0: i32) -> (i32, i32) {
    %c0_i32 = arith.constant 0 : i32
    %c0_i32_0 = arith.constant 0 : i32
    %c0_i32_1 = arith.constant 0 : i32
    return %c0_i32, %c0_i32_0 : i32, i32
  }
  func.func @transform_7(%arg0: i32) -> (i32, i32) {
    %c0_i32 = arith.constant 0 : i32
    %c0_i32_0 = arith.constant 0 : i32
    %c0_i32_1 = arith.constant 0 : i32
    return %c0_i32, %c0_i32_0 : i32, i32
  }
  func.func @transform_8(%arg0: i32) -> (i32, i32) {
    %c0_i32 = arith.constant 0 : i32
    %c0_i32_0 = arith.constant 0 : i32
    %c0_i32_1 = arith.constant 0 : i32
    return %c0_i32, %c0_i32_0 : i32, i32
  }
  func.func @transform_9(%arg0: i32) -> (i32, i32) {
    %c0_i32 = arith.constant 0 : i32
    %c0_i32_0 = arith.constant 0 : i32
    %c0_i32_1 = arith.constant 0 : i32
    return %c0_i32, %c0_i32_0 : i32, i32
  }
  func.func @transform_10(%arg0: i32) -> (i32, i32) {
    %c0_i32 = arith.constant 0 : i32
    %c0_i32_0 = arith.constant 0 : i32
    %c0_i32_1 = arith.constant 0 : i32
    return %c0_i32, %c0_i32_0 : i32, i32
  }
  func.func @transform_11(%arg0: i32) -> (i32, i32) {
    %c0_i32 = arith.constant 0 : i32
    %c0_i32_0 = arith.constant 0 : i32
    %c0_i32_1 = arith.constant 0 : i32
    return %c0_i32, %c0_i32_0 : i32, i32
  }
  func.func @transform_12(%arg0: i32) -> (i32, i32) {
    %c0_i32 = arith.constant 0 : i32
    %c0_i32_0 = arith.constant 0 : i32
    %c0_i32_1 = arith.constant 0 : i32
    return %c0_i32, %c0_i32_0 : i32, i32
  }
  func.func @transform_13(%arg0: i32) -> (i32, i32, i32) {
    %c0_i32 = arith.constant 0 : i32
    %c0_i32_0 = arith.constant 0 : i32
    %c0_i32_1 = arith.constant 0 : i32
    return %arg0, %c0_i32, %c0_i32_0 : i32, i32, i32
  }
}

</mosaic_0001>

<bundles_post_ra>
// kernel: tpu_custom_call.1
= control target key start
LH: loop header
LB: loop body
LE: loop exit
PB: predicated region body
PF: predicated region fallthrough
CT: control target
= control target key end

     0   :  { %s4182_s0 = inlined_call_operand.hbm [shape: f32[2,8,128], index: 0, kind: input, shape index: {}]   ;;  %s4183_s1 = inlined_call_operand.hbm [shape: f32[1,128], index: 1, kind: input, shape index: {}]   ;;  %s4184_s2 = inlined_call_operand.hbm [shape: f32[1,128], index: 2, kind: input, shape index: {}]   ;;  %s4185_s3 = inlined_call_operand.hbm [shape: bf16[128,384], index: 3, kind: input, shape index: {}]   ;;  %s4186_s4 = inlined_call_operand.hbm [shape: f32[1,384], index: 4, kind: input, shape index: {}]   ;;  %s4187_s5 = inlined_call_operand.hbm [shape: bf16[128,128], index: 5, kind: input, shape index: {}]   ;;  %s4188_s6 = inlined_call_operand.hbm [shape: f32[1,128], index: 6, kind: input, shape index: {}]   ;;  %s4189_s7 = inlined_call_operand.hbm [shape: f32[1,128], index: 7, kind: input, shape index: {}]   ;;  %s4190_s8 = inlined_call_operand.hbm [shape: f32[1,128], index: 8, kind: input, shape index: {}]   ;;  %s4191_s9 = inlined_call_operand.hbm [shape: bf16[128,512], index: 9, kind: input, shape index: {}]   ;;  %s4192_s10 = inlined_call_operand.hbm [shape: f32[1,512], index: 10, kind: input, shape index: {}]   ;;  %s4193_s11 = inlined_call_operand.hbm [shape: bf16[512,128], index: 11, kind: input, shape index: {}]   ;;  %s4194_s12 = inlined_call_operand.hbm [shape: f32[1,128], index: 12, kind: input, shape index: {}]   ;;  %s4195_s13 = inlined_call_operand.hbm [shape: f32[2,8,128], index: 13, kind: output, shape index: {}]  }
   0x1   :  { %4207 = sst [smem:[#allocation35_spill]] %s4182_s0 }
   0x2   :  { %4208 = sst [smem:[#allocation36_spill]] %s4183_s1 }
   0x3   :  { %4209 = sst [smem:[#allocation37_spill]] %s4185_s3 }
   0x4   :  { %4210 = sst [smem:[#allocation38_spill]] %s4195_s13 }
   0x5   :  { %18 = vsyncpa [#allocation3], 0 }
   0x6   :  { %20 = vsyncpa [#allocation3 + $0x1], 0 }
   0x7   :  { %21 = vsyncpa [#allocation6], 0 }
   0x8   :  { %22 = vsyncpa [#allocation9], 0 }
   0x9   :  { %23 = vsyncpa [#allocation12], 0 }
   0xa   :  { %24 = vsyncpa [#allocation15], 0 }
   0xb   :  { %25 = vsyncpa [#allocation18], 0 }
   0xc   :  { %26 = vsyncpa [#allocation21], 0 }
   0xd   :  { %27 = vsyncpa [#allocation4], 0 }
   0xe   :  { %29 = vsyncpa [#allocation4 + $0x1], 0  ;;  %s3594_s25 = smov 0   ;;  %s3596_s26 = smov 0  }
   0xf   :  { %s3598_s27 = smov 0   ;;  %s3600_s28 = smov 0  }
  0x10 LB: > { %4211 = sst [smem:[#allocation32_spill]] %s3484_s25  ;;  %s3498_s29 = smov [#allocation5]   ;;  %s3496_s28 = sphi %s3600_s28, %s4253_s28   ;;  %s3492_s27 = sphi %s3598_s27, %s4252_s27   ;;  %s3488_s26 = sphi %s3596_s26, %s4251_s26   ;;  %s3484_s25 = sphi %s3594_s25, %s4250_s25  }
  0x11   : > { %s357_s30 = sshll.u32 %s3498_s29, 4  ;;  %s3615_s14 = sadd.s32 4294967295, %s3496_s28   ;;  %s3620_s30 = int_to_ptr.vmem [resolvable:$true] %s357_s30 }
  0x12   : > { %4212 = sst [smem:[#allocation33_spill]] %s3615_s14  ;;  %p2390_p0 = scmp.ge.s32.totalorder %s3496_s28, 1 }
  0x13   : > { %p4202_p1 = scmp.eq.s32.totalorder %s3615_s14, 0  ;;  %p344_p2 = scmp.lt.s32.totalorder %s3496_s28, 3 }
  0x14   : > { %s3499_s16 = smov [#allocation8]   ;;  %s3500_s19 = smov [#allocation11]  }
  0x15   : > { %p3622_p3 = pnand %p2390_p0, %p344_p2  ;;  %s378_s17 = sshll.u32 %s3499_s16, 4  ;;  %s3629_s17 = int_to_ptr.vmem [resolvable:$true] %s378_s17 }
  0x16   : > { %s402_s20 = sshll.u32 %s3500_s19, 4  ;;  %s4216_s1 = sld [smem:[#allocation36_spill]]  ;;  %s3637_s20 = int_to_ptr.vmem [resolvable:$true] %s402_s20 }
  0x17   : > { %s4213_s15 = scalar_select %p3622_p3, 1, 0 }
  0x18   : > { %p2757_p5 = pneg %p3622_p3 }
  0x19   : > { %4214 = sst [smem:[#allocation34_spill]] %s4213_s15 }
  0x1a   : > { %p3633_p6 = pnand %p2757_p5, %p4202_p1 }
  0x1c   : > { %s3040_s23 = scalar_lea.hbm %s4216_s1, 16  ;;  %p3647_p8 = pneg %p3633_p6 }
  0x1d   : > { %p3041_p7 = scmp.ne.s32.totalorder %s4216_s1, %s3040_s23  ;;  %p3047_p11 = scmp.lt.u32.totalorder %s3040_s23, %s4216_s1 }
  0x1f   : > { %p3043_p9 = pnand %p3647_p8, %p3041_p7 }
  0x21   : > { %p3044_p10 = pneg %p3043_p9 }
  0x23   : > { %p3049_p12 = pnand %p3047_p11, %p3044_p10 }
  0x25   : > { %3052 = shalt.err (!%p3049_p12)
}
  0x26   : > { %s3053_s21 = scalar_lea.vmem %s3620_s30, 16  ;;  %s3060_s22 = scalar_lea.vmem %s3620_s30, 32 }
  0x27   : > { %p3054_p13 = scmp.ne.s32.totalorder %s3620_s30, %s3053_s21  ;;  %p3061_p5 = scmp.lt.s32.totalorder %s3620_s30, %s3620_s30 }
  0x28   : > { %p3062_p7 = scmp.lt.s32.totalorder %s3060_s22, %s3053_s21 }
  0x29   : > { %p3056_p0 = pnand %p3054_p13, %p3647_p8 }
  0x2a   : > { %p3063_p9 = por %p3062_p7, %p3061_p5 }
  0x2b   : > { %p3057_p2 = pneg %p3056_p0 }
  0x2d   : > { %p3064_p4 = pnand %p3063_p9, %p3057_p2 }
  0x2f   : > { %3067 = shalt.err (!%p3064_p4)
}
  0x30   : > { %2760 = dma.hbm_to_vmem [thread:$0]  (!%p3633_p6), %s4216_s1, 16, %s3620_s30, [#allocation6]  }
  0x31   : > { %s4218_s3 = sld [smem:[#allocation37_spill]] }
  0x37   : > { %s3068_s19 = scalar_lea.hbm %s4218_s3, 3072 }
  0x38   : > { %p3069_p10 = scmp.ne.s32.totalorder %s4218_s3, %s3068_s19  ;;  %p3075_p4 = scmp.lt.u32.totalorder %s3068_s19, %s4218_s3 }
  0x3a   : > { %p3071_p11 = pnand %p3069_p10, %p3647_p8 }
  0x3c   : > { %p3072_p12 = pneg %p3071_p11 }
  0x3e   : > { %p3077_p13 = pnand %p3075_p4, %p3072_p12 }
  0x40   : > { %3080 = shalt.err (!%p3077_p13)
}
  0x41   : > { %s3081_s30 = scalar_lea.vmem %s3629_s17, 3072  ;;  %p3089_p7 = scmp.lt.s32.totalorder %s3629_s17, %s3629_s17 }
  0x42   : > { %p3082_p0 = scmp.ne.s32.totalorder %s3629_s17, %s3081_s30  ;;  %p3090_p9 = scmp.lt.s32.totalorder %s3081_s30, %s3081_s30 }
  0x44   : > { %p3084_p2 = pnand %p3082_p0, %p3647_p8  ;;  %p3091_p10 = por %p3090_p9, %p3089_p7 }
  0x46   : > { %p3085_p5 = pneg %p3084_p2 }
  0x48   : > { %p3092_p11 = pnand %p3091_p10, %p3085_p5 }
  0x4a   : > { %3095 = shalt.err (!%p3092_p11)
}
  0x4b   : > { %s3501_s0 = smov 192   ;;  %s3502_s15 = smov 12  }
  0x4c   : > { %2766 = dma.hbm_to_vmem [thread:$0]  (!%p3633_p6), %s4218_s3, 3072, %s3629_s17, [#allocation9], %s3501_s0, %s3501_s0, %s3502_s15  }
  0x4d   : > { %s3096_s19 = scalar_lea.hbm %s4187_s5, 1024 }
  0x4e   : > { %p3097_p12 = scmp.ne.s32.totalorder %s4187_s5, %s3096_s19  ;;  %p3103_p0 = scmp.lt.u32.totalorder %s3096_s19, %s4187_s5 }
  0x50   : > { %p3099_p4 = pnand %p3097_p12, %p3647_p8 }
  0x52   : > { %p3100_p13 = pneg %p3099_p4 }
  0x54   : > { %p3105_p2 = pnand %p3103_p0, %p3100_p13 }
  0x56   : > { %3108 = shalt.err (!%p3105_p2)
}
  0x57   : > { %s3109_s17 = scalar_lea.vmem %s3637_s20, 1024  ;;  %p3117_p10 = scmp.lt.s32.totalorder %s3637_s20, %s3637_s20 }
  0x58   : > { %p3110_p5 = scmp.ne.s32.totalorder %s3637_s20, %s3109_s17  ;;  %p3118_p11 = scmp.lt.s32.totalorder %s3109_s17, %s3109_s17 }
  0x5a   : > { %p3112_p7 = pnand %p3110_p5, %p3647_p8  ;;  %p3119_p12 = por %p3118_p11, %p3117_p10 }
  0x5c   : > { %p3113_p9 = pneg %p3112_p7 }
  0x5e   : > { %p3120_p4 = pnand %p3119_p12, %p3113_p9 }
  0x60   : > { %3123 = shalt.err (!%p3120_p4)
}
  0x61   : > { %s4204_s0 = smov 64   ;;  %s4205_s1 = smov 4  }
  0x62   : > { %2772 = dma.hbm_to_vmem [thread:$0]  (!%p3633_p6), %s4187_s5, 1024, %s3637_s20, [#allocation12], %s4204_s0, %s4204_s0, %s4205_s1  }
  0x63   : > { %s3505_s23 = smov [#allocation14]   ;;  %s3506_s29 = smov [#allocation17]  }
  0x64   : > { %s427_s24 = sshll.u32 %s3505_s23, 4  ;;  %s448_s19 = sshll.u32 %s3506_s29, 4  ;;  %s428_s24 = int_to_ptr.vmem [resolvable:$true] %s427_s24  ;;  %s449_s19 = int_to_ptr.vmem [resolvable:$true] %s448_s19 }
  0x65   : > { %s3124_s30 = scalar_lea.hbm %s4189_s7, 16 }
  0x66   : > { %p3125_p13 = scmp.ne.s32.totalorder %s4189_s7, %s3124_s30  ;;  %p3131_p5 = scmp.lt.u32.totalorder %s3124_s30, %s4189_s7 }
  0x68   : > { %p3127_p0 = pnand %p3125_p13, %p3647_p8 }
  0x6a   : > { %p3128_p2 = pneg %p3127_p0 }
  0x6c   : > { %p3133_p7 = pnand %p3131_p5, %p3128_p2 }
  0x6e   : > { %3136 = shalt.err (!%p3133_p7)
}
  0x6f   : > { %s3137_s20 = scalar_lea.vmem %s428_s24, 16  ;;  %s3144_s15 = scalar_lea.vmem %s428_s24, 32 }
  0x70   : > { %p3138_p9 = scmp.ne.s32.totalorder %s428_s24, %s3137_s20  ;;  %p3145_p12 = scmp.lt.s32.totalorder %s428_s24, %s428_s24 }
  0x71   : > { %p3146_p4 = scmp.lt.s32.totalorder %s3144_s15, %s3137_s20 }
  0x72   : > { %p3140_p10 = pnand %p3138_p9, %p3647_p8 }
  0x73   : > { %p3147_p1 = por %p3146_p4, %p3145_p12 }
  0x74   : > { %p3141_p11 = pneg %p3140_p10 }
  0x76   : > { %p3148_p3 = pnand %p3147_p1, %p3141_p11 }
  0x78   : > { %3151 = shalt.err (!%p3148_p3)
}
  0x79   : > { %2778 = dma.hbm_to_vmem [thread:$0]  (!%p3633_p6), %s4189_s7, 16, %s428_s24, [#allocation15]  }
  0x7a   : > { %s3152_s23 = scalar_lea.hbm %s4191_s9, 4096 }
  0x7b   : > { %p3153_p13 = scmp.ne.s32.totalorder %s4191_s9, %s3152_s23  ;;  %p3159_p3 = scmp.lt.u32.totalorder %s3152_s23, %s4191_s9 }
  0x7d   : > { %p3155_p0 = pnand %p3153_p13, %p3647_p8 }
  0x7f   : > { %p3156_p1 = pneg %p3155_p0 }
  0x81   : > { %p3161_p2 = pnand %p3159_p3, %p3156_p1 }
  0x83   : > { %3164 = shalt.err (!%p3161_p2)
}
  0x84   : > { %s3165_s17 = scalar_lea.vmem %s449_s19, 4096  ;;  %p3173_p10 = scmp.lt.s32.totalorder %s449_s19, %s449_s19 }
  0x85   : > { %p3166_p5 = scmp.ne.s32.totalorder %s449_s19, %s3165_s17  ;;  %p3174_p11 = scmp.lt.s32.totalorder %s3165_s17, %s3165_s17 }
  0x87   : > { %p3168_p7 = pnand %p3166_p5, %p3647_p8  ;;  %p3175_p12 = por %p3174_p11, %p3173_p10 }
  0x89   : > { %p3169_p9 = pneg %p3168_p7 }
  0x8b   : > { %p3176_p4 = pnand %p3175_p12, %p3169_p9 }
  0x8d   : > { %3179 = shalt.err (!%p3176_p4)
}
  0x8e   : > { %s3507_s24 = smov 256   ;;  %s3508_s20 = smov 16  }
  0x8f   : > { %2784 = dma.hbm_to_vmem [thread:$0]  (!%p3633_p6), %s4191_s9, 4096, %s449_s19, [#allocation18], %s3507_s24, %s3507_s24, %s3508_s20  }
  0x90   : > { %s3509_s13 = smov [#allocation20]   ;;  %s3510_s14 = smov [#allocation7]  }
  0x91   : > { %s472_s25 = sshll.u32 %s3509_s13, 4  ;;  %s368_s23 = sshll.u32 %s3510_s14, 4  ;;  %s473_s25 = int_to_ptr.vmem [resolvable:$true] %s472_s25  ;;  %s369_s23 = int_to_ptr.vmem [resolvable:$true] %s368_s23 }
  0x92   : > { %s3180_s22 = scalar_lea.hbm %s4193_s11, 4096 }
  0x93   : > { %p3181_p13 = scmp.ne.s32.totalorder %s4193_s11, %s3180_s22  ;;  %p3187_p3 = scmp.lt.u32.totalorder %s3180_s22, %s4193_s11 }
  0x95   : > { %p3183_p0 = pnand %p3181_p13, %p3647_p8 }
  0x97   : > { %p3184_p1 = pneg %p3183_p0 }
  0x99   : > { %p3189_p2 = pnand %p3187_p3, %p3184_p1 }
  0x9b   : > { %3192 = shalt.err (!%p3189_p2)
}
  0x9c   : > { %s3193_s19 = scalar_lea.vmem %s473_s25, 4096  ;;  %p3201_p10 = scmp.lt.s32.totalorder %s473_s25, %s473_s25 }
  0x9d   : > { %p3194_p5 = scmp.ne.s32.totalorder %s473_s25, %s3193_s19  ;;  %p3202_p11 = scmp.lt.s32.totalorder %s3193_s19, %s3193_s19 }
  0x9f   : > { %p3196_p7 = pnand %p3194_p5, %p3647_p8  ;;  %p3203_p12 = por %p3202_p11, %p3201_p10 }
  0xa1   : > { %p3197_p9 = pneg %p3196_p7 }
  0xa3   : > { %p3204_p4 = pnand %p3203_p12, %p3197_p9 }
  0xa5   : > { %3207 = shalt.err (!%p3204_p4)
}
  0xa6   : > { %s4219_s24 = smov 4   ;;  %s4220_s20 = smov 64  }
  0xa7   : > { %2790 = dma.hbm_to_vmem [thread:$0]  (!%p3633_p6), %s4193_s11, 4096, %s473_s25, [#allocation21], %s4220_s20, %s4220_s20, %s4219_s24  }
  0xa8   : > { %s3208_s13 = scalar_lea.hbm %s4184_s2, 16 }
  0xa9   : > { %p3209_p13 = scmp.ne.s32.totalorder %s4184_s2, %s3208_s13  ;;  %p3215_p3 = scmp.lt.u32.totalorder %s3208_s13, %s4184_s2 }
  0xab   : > { %p3211_p0 = pnand %p3209_p13, %p3647_p8 }
  0xad   : > { %p3212_p1 = pneg %p3211_p0 }
  0xaf   : > { %p3217_p2 = pnand %p3215_p3, %p3212_p1 }
  0xb1   : > { %3220 = shalt.err (!%p3217_p2)
}
  0xb2   : > { %s3221_s30 = scalar_lea.vmem %s369_s23, 16  ;;  %s3228_s25 = scalar_lea.vmem %s369_s23, 32 }
  0xb3   : > { %p3222_p5 = scmp.ne.s32.totalorder %s369_s23, %s3221_s30  ;;  %p3229_p10 = scmp.lt.s32.totalorder %s369_s23, %s369_s23 }
  0xb4   : > { %p3230_p11 = scmp.lt.s32.totalorder %s3228_s25, %s3221_s30 }
  0xb5   : > { %p3224_p7 = pnand %p3222_p5, %p3647_p8 }
  0xb6   : > { %p3231_p12 = por %p3230_p11, %p3229_p10 }
  0xb7   : > { %p3225_p9 = pneg %p3224_p7 }
  0xb9   : > { %p3232_p4 = pnand %p3231_p12, %p3225_p9 }
  0xbb   : > { %3235 = shalt.err (!%p3232_p4)
}
  0xbc   : > { %2763 = dma.hbm_to_vmem [thread:$0]  (!%p3633_p6), %s4184_s2, 16, %s369_s23, [#allocation6]  }
  0xbd   : > { %s3511_s24 = smov [#allocation10]   ;;  %s3512_s0 = smov [#allocation13]  }
  0xbe   : > { %s392_s20 = sshll.u32 %s3511_s24, 4  ;;  %s416_s1 = sshll.u32 %s3512_s0, 4  ;;  %s393_s20 = int_to_ptr.vmem [resolvable:$true] %s392_s20  ;;  %s417_s1 = int_to_ptr.vmem [resolvable:$true] %s416_s1 }
  0xbf   : > { %s3236_s13 = scalar_lea.hbm %s4186_s4, 48 }
  0xc0   : > { %p3237_p13 = scmp.ne.s32.totalorder %s4186_s4, %s3236_s13  ;;  %p3243_p3 = scmp.lt.u32.totalorder %s3236_s13, %s4186_s4 }
  0xc2   : > { %p3239_p0 = pnand %p3237_p13, %p3647_p8 }
  0xc4   : > { %p3240_p1 = pneg %p3239_p0 }
  0xc6   : > { %p3245_p2 = pnand %p3243_p3, %p3240_p1 }
  0xc8   : > { %3248 = shalt.err (!%p3245_p2)
}
  0xc9   : > { %s3249_s23 = scalar_lea.vmem %s393_s20, 48  ;;  %s3256_s30 = scalar_lea.vmem %s393_s20, 64 }
  0xca   : > { %p3250_p5 = scmp.ne.s32.totalorder %s393_s20, %s3249_s23  ;;  %p3257_p10 = scmp.lt.s32.totalorder %s393_s20, %s393_s20 }
  0xcb   : > { %p3258_p11 = scmp.lt.s32.totalorder %s3256_s30, %s3249_s23 }
  0xcc   : > { %p3252_p7 = pnand %p3250_p5, %p3647_p8 }
  0xcd   : > { %p3259_p12 = por %p3258_p11, %p3257_p10 }
  0xce   : > { %p3253_p9 = pneg %p3252_p7 }
  0xd0   : > { %p3260_p4 = pnand %p3259_p12, %p3253_p9 }
  0xd2   : > { %3263 = shalt.err (!%p3260_p4)
}
  0xd3   : > { %2769 = dma.hbm_to_vmem [thread:$0]  (!%p3633_p6), %s4186_s4, 48, %s393_s20, [#allocation9]  }
  0xd4   : > { %s3264_s0 = scalar_lea.hbm %s4188_s6, 16 }
  0xd5   : > { %p3265_p13 = scmp.ne.s32.totalorder %s4188_s6, %s3264_s0  ;;  %p3271_p3 = scmp.lt.u32.totalorder %s3264_s0, %s4188_s6 }
  0xd7   : > { %p3267_p0 = pnand %p3265_p13, %p3647_p8 }
  0xd9   : > { %p3268_p1 = pneg %p3267_p0 }
  0xdb   : > { %p3273_p2 = pnand %p3271_p3, %p3268_p1 }
  0xdd   : > { %3276 = shalt.err (!%p3273_p2)
}
  0xde   : > { %s3277_s29 = scalar_lea.vmem %s417_s1, 16  ;;  %s3284_s20 = scalar_lea.vmem %s417_s1, 32 }
  0xdf   : > { %p3278_p5 = scmp.ne.s32.totalorder %s417_s1, %s3277_s29  ;;  %p3285_p10 = scmp.lt.s32.totalorder %s417_s1, %s417_s1 }
  0xe0   : > { %p3286_p11 = scmp.lt.s32.totalorder %s3284_s20, %s3277_s29 }
  0xe1   : > { %p3280_p7 = pnand %p3278_p5, %p3647_p8 }
  0xe2   : > { %p3287_p12 = por %p3286_p11, %p3285_p10 }
  0xe3   : > { %p3281_p9 = pneg %p3280_p7 }
  0xe5   : > { %p3288_p4 = pnand %p3287_p12, %p3281_p9 }
  0xe7   : > { %3291 = shalt.err (!%p3288_p4)
}
  0xe8   : > { %2775 = dma.hbm_to_vmem [thread:$0]  (!%p3633_p6), %s4188_s6, 16, %s417_s1, [#allocation12]  }
  0xe9   : > { %s3513_s23 = smov [#allocation16]   ;;  %s3514_s25 = smov [#allocation19]  }
  0xea   : > { %s438_s30 = sshll.u32 %s3513_s23, 4  ;;  %s462_s17 = sshll.u32 %s3514_s25, 4  ;;  %s439_s30 = int_to_ptr.vmem [resolvable:$true] %s438_s30  ;;  %s463_s17 = int_to_ptr.vmem [resolvable:$true] %s462_s17 }
  0xeb   : > { %s3292_s0 = scalar_lea.hbm %s4190_s8, 16 }
  0xec   : > { %p3293_p13 = scmp.ne.s32.totalorder %s4190_s8, %s3292_s0  ;;  %p3299_p3 = scmp.lt.u32.totalorder %s3292_s0, %s4190_s8 }
  0xee   : > { %p3295_p0 = pnand %p3293_p13, %p3647_p8 }
  0xf0   : > { %p3296_p1 = pneg %p3295_p0 }
  0xf2   : > { %p3301_p2 = pnand %p3299_p3, %p3296_p1 }
  0xf4   : > { %3304 = shalt.err (!%p3301_p2)
}
  0xf5   : > { %s3305_s1 = scalar_lea.vmem %s439_s30, 16  ;;  %s3312_s29 = scalar_lea.vmem %s439_s30, 32 }
  0xf6   : > { %p3306_p5 = scmp.ne.s32.totalorder %s439_s30, %s3305_s1  ;;  %p3313_p10 = scmp.lt.s32.totalorder %s439_s30, %s439_s30 }
  0xf7   : > { %p3314_p11 = scmp.lt.s32.totalorder %s3312_s29, %s3305_s1 }
  0xf8   : > { %p3308_p7 = pnand %p3306_p5, %p3647_p8 }
  0xf9   : > { %p3315_p12 = por %p3314_p11, %p3313_p10 }
  0xfa   : > { %p3309_p9 = pneg %p3308_p7 }
  0xfc   : > { %p3316_p4 = pnand %p3315_p12, %p3309_p9 }
  0xfe   : > { %3319 = shalt.err (!%p3316_p4)
}
  0xff   : > { %2781 = dma.hbm_to_vmem [thread:$0]  (!%p3633_p6), %s4190_s8, 16, %s439_s30, [#allocation15]  }
 0x100   : > { %s3320_s25 = scalar_lea.hbm %s4192_s10, 64 }
 0x101   : > { %p3321_p13 = scmp.ne.s32.totalorder %s4192_s10, %s3320_s25  ;;  %p3327_p3 = scmp.lt.u32.totalorder %s3320_s25, %s4192_s10 }
 0x103   : > { %p3323_p0 = pnand %p3321_p13, %p3647_p8 }
 0x105   : > { %p3324_p1 = pneg %p3323_p0 }
 0x107   : > { %p3329_p2 = pnand %p3327_p3, %p3324_p1 }
 0x109   : > { %3332 = shalt.err (!%p3329_p2)
}
 0x10a   : > { %s3333_s3 = scalar_lea.vmem %s463_s17, 64  ;;  %p3341_p10 = scmp.lt.s32.totalorder %s463_s17, %s463_s17 }
 0x10b   : > { %p3334_p5 = scmp.ne.s32.totalorder %s463_s17, %s3333_s3  ;;  %p3342_p11 = scmp.lt.s32.totalorder %s3333_s3, %s3333_s3 }
 0x10d   : > { %p3336_p7 = pnand %p3334_p5, %p3647_p8  ;;  %p3343_p12 = por %p3342_p11, %p3341_p10 }
 0x10f   : > { %p3337_p9 = pneg %p3336_p7 }
 0x111   : > { %p3344_p4 = pnand %p3343_p12, %p3337_p9 }
 0x113   : > { %3347 = shalt.err (!%p3344_p4)
}
 0x114   : > { %2787 = dma.hbm_to_vmem [thread:$0]  (!%p3633_p6), %s4192_s10, 64, %s463_s17, [#allocation18]  }
 0x115   : > { %s3515_s14 = smov [#allocation22]   ;;  %s3348_s21 = scalar_lea.hbm %s4194_s12, 16 }
 0x116   : > { %s486_s1 = sshll.u32 %s3515_s14, 4  ;;  %p3349_p13 = scmp.ne.s32.totalorder %s4194_s12, %s3348_s21  ;;  %s487_s1 = int_to_ptr.vmem [resolvable:$true] %s486_s1 }
 0x117   : > { %p3355_p3 = scmp.lt.u32.totalorder %s3348_s21, %s4194_s12 }
 0x118   : > { %p3351_p0 = pnand %p3349_p13, %p3647_p8 }
 0x11a   : > { %p3352_p1 = pneg %p3351_p0 }
 0x11c   : > { %p3357_p2 = pnand %p3355_p3, %p3352_p1 }
 0x11e   : > { %3360 = shalt.err (!%p3357_p2)
}
 0x11f   : > { %s3361_s17 = scalar_lea.vmem %s487_s1, 16  ;;  %s3368_s24 = scalar_lea.vmem %s487_s1, 32 }
 0x120   : > { %p3362_p5 = scmp.ne.s32.totalorder %s487_s1, %s3361_s17  ;;  %p3369_p10 = scmp.lt.s32.totalorder %s487_s1, %s487_s1 }
 0x121   : > { %p3370_p11 = scmp.lt.s32.totalorder %s3368_s24, %s3361_s17 }
 0x122   : > { %p3364_p7 = pnand %p3362_p5, %p3647_p8 }
 0x123   : > { %p3371_p12 = por %p3370_p11, %p3369_p10 }
 0x124   : > { %p3365_p9 = pneg %p3364_p7 }
 0x126   : > { %p3372_p4 = pnand %p3371_p12, %p3365_p9 }
 0x128   : > { %3375 = shalt.err (!%p3372_p4)
}
 0x129   : > { %s4221_s16 = sld [smem:[#allocation32_spill]]  ;;  %s4222_s3 = sld [smem:[#allocation33_spill]] }
 0x12a   : > { %2793 = dma.hbm_to_vmem [thread:$0]  (!%p3633_p6), %s4194_s12, 16, %s487_s1, [#allocation21]  }
 0x12b   : > { %s2389_s30 = sadd.s32 4294967294, %s3496_s28   ;;  %s3885_s18 = sadd.s32 1, %s3496_s28  }
 0x12c   : > { %s39_s13 = ssub.s32 %s3496_s28, %s3885_s18  ;;  %s42_s14 = sadd.s32 1, %s3492_s27 }
 0x12d   : > { %p40_p8 = scmp.eq.s32.totalorder %s39_s13, 0  ;;  %p49_p13 = scmp.ne.s32.totalorder %s3492_s27, %s3488_s26 }
 0x12e   : > { %p50_p0 = scmp.eq.s32.totalorder %s3496_s28, 0  ;;  %p337_p7 = scmp.eq.s32.totalorder %s2389_s30, 1 }
 0x12f   : > { %p55_p1 = scmp.ne.s32.totalorder %s3488_s26, %s4221_s16  ;;  %p4224_p2 = scmp.eq.s32.totalorder %s4222_s3, 0 }
 0x130   : > { %s3896_s29 = scalar_select %p40_p8, %s3492_s27, %s42_s14  }
 0x131   : > { %p3898_p3 = por %p50_p0, %p49_p13  ;;  %p3904_p6 = por %p4224_p2, %p55_p1 }
 0x132   : > { %p331_p5 = scmp.eq.s32.totalorder %s4222_s3, 1  ;;  %p2814_p9 = scmp.lt.s32.totalorder %s3496_s28, 2 }
 0x133   : > { %s497_s21 = sand.u32 1, %s3492_s27   ;;  %p3915_p11 = por %p337_p7, %p55_p1 }
 0x134   : > { %p3911_p10 = por %p331_p5, %p49_p13  ;;  %s2404_s25 = sshll.u32 %s497_s21, 3 }
 0x135   : > { %s4227_s23 = scalar_select %p3915_p11, 1, 0 }
 0x136   : > { %s4226_s22 = scalar_select %p3911_p10, 1, 0 }
 0x137   : > { %s2405_s19 = sshll.u32 %s3496_s28, 7  ;;  %s4228_s0 = sld [smem:[#allocation35_spill]] }
 0x138   : > { %s501_s16 = scalar_lea.vmem [#allocation2], %s2404_s25  ;;  %p3929_p12 = pnand %p2814_p9, %p3898_p3 }
 0x139   : > { %s508_s3 = sshll.u32 %s501_s16, 4  ;;  %s498_s13 = scalar_lea.sflag [#allocation3], %s497_s21  ;;  %s3925_s3 = int_to_ptr.vmem [resolvable:$true] %s508_s3 }
 0x13a   : > { %p3378_p8 = pneg %p3929_p12 }
 0x13d   : > { %s3923_s15 = scalar_lea.hbm %s4228_s0, %s2405_s19  ;;  %s3381_s17 = scalar_lea.hbm %s4228_s0, 256 }
 0x13e   : > { %s3376_s14 = scalar_lea.hbm %s3923_s15, 128  ;;  %p3382_p1 = scmp.lt.u32.totalorder %s3923_s15, %s4228_s0 }
 0x13f   : > { %p3377_p4 = scmp.ne.s32.totalorder %s3923_s15, %s3376_s14  ;;  %p3383_p3 = scmp.lt.u32.totalorder %s3381_s17, %s3376_s14 }
 0x140   : > { %p3385_p5 = scmp.lt.u32.totalorder %s3376_s14, %s3923_s15 }
 0x141   : > { %p3379_p13 = pnand %p3378_p8, %p3377_p4  ;;  %p3384_p2 = por %p3383_p3, %p3382_p1 }
 0x143   : > { %p3380_p0 = pneg %p3379_p13  ;;  %p3386_p7 = por %p3385_p5, %p3384_p2 }
 0x145   : > { %p3387_p9 = pnand %p3386_p7, %p3380_p0 }
 0x147   : > { %3390 = shalt.err (!%p3387_p9)
}
 0x148   : > { %s3391_s21 = scalar_lea.vmem %s3925_s3, 128  ;;  %s3516_s16 = smov [#allocation2]  }
 0x149   : > { %p3392_p4 = scmp.ne.s32.totalorder %s3925_s3, %s3391_s21  ;;  %s3396_s25 = sshll.u32 %s3516_s16, 4  ;;  %s3397_s25 = int_to_ptr.vmem [resolvable:$false] %s3396_s25 }
 0x14a   : > { %s3398_s19 = scalar_lea.vmem %s3397_s25, 256  ;;  %p3399_p10 = scmp.lt.s32.totalorder %s3925_s3, %s3397_s25 }
 0x14b   : > { %p3394_p13 = pnand %p3392_p4, %p3378_p8  ;;  %p3400_p1 = scmp.lt.s32.totalorder %s3398_s19, %s3391_s21 }
 0x14d   : > { %p3395_p11 = pneg %p3394_p13  ;;  %p3401_p3 = por %p3400_p1, %p3399_p10 }
 0x14f   : > { %p3402_p2 = pnand %p3401_p3, %p3395_p11 }
 0x151   : > { %3405 = shalt.err (!%p3402_p2)
}
 0x152   : > { %2797 = dma.hbm_to_vmem [thread:$0]  (!%p3929_p12), %s3923_s15, 128, %s3925_s3, %s498_s13  }
 0x153   : > { %s4230_s14 = sld [smem:[#allocation34_spill]] }
 0x159   : > { %p4231_p0 = scmp.ne.s32.totalorder %s4230_s14, 0 }
 0x15a   : > { %s3961_s17 = sand.u32 (!%p4231_p0), 1, %s3488_s26  }
 0x15b   : > { %517 = sbr.rel (%p4231_p0) target bundleno = 3344 (0xd10), region = 72  ;;  %s2407_s20 = sshll.u32 (!%p4231_p0), %s3961_s17, 3 }
 0x15c   : > { %s520_s24 = scalar_lea.sflag (!%p4231_p0), [#allocation3], %s3961_s17  ;;  %s523_s21 = scalar_lea.vmem (!%p4231_p0), [#allocation2], %s2407_s20 }
 0x162   : > { %3451 = dma.done.wait (%p3904_p6), %s520_s24, 128  }
 0x163   : > { %3453 = vsyncadd (%p3904_p6), %s520_s24, 4294967168  ;;  %s4232_s15 = sld [smem:[#allocation33_spill]] }
 0x169   : > { %p4233_p10 = scmp.eq.s32.totalorder %s4232_s15, 0 }
 0x16b   : > { %3455 = dma.done.wait (%p4233_p10), [#allocation6], 32   ;;  %p4234_p11 = pmov %p4233_p10 }
 0x16c   : > { %p4235_p12 = pmov %p4233_p10 }
 0x16d   : > { %3457 = vsyncadd (%p4234_p11), [#allocation6], 4294967264 }
 0x16e   : > { %3459 = dma.done.wait (%p4235_p12), [#allocation9], 3120   ;;  %p4236_p8 = pmov %p4233_p10 }
 0x170   : > { %3461 = vsyncadd (%p4236_p8), [#allocation9], 4294964176  ;;  %p4237_p5 = pmov %p4236_p8 }
 0x172   : > { %3463 = dma.done.wait (%p4237_p5), [#allocation12], 1040   ;;  %p4238_p7 = pmov %p4237_p5 }
 0x173   : > { %p4239_p6 = pmov %p4237_p5 }
 0x174   : > { %3465 = vsyncadd (%p4238_p7), [#allocation12], 4294966256 }
 0x175   : > { %3467 = dma.done.wait (%p4239_p6), [#allocation15], 32   ;;  %p4240_p9 = pmov %p4237_p5 }
 0x176   : > { %p4241_p4 = pmov %p4237_p5 }
 0x177   : > { %3469 = vsyncadd (%p4240_p9), [#allocation15], 4294967264 }
 0x178   : > { %3471 = dma.done.wait (%p4241_p4), [#allocation18], 4160   ;;  %p4242_p13 = pmov %p4241_p4 }
 0x179   : > { %p4243_p1 = pmov %p4241_p4 }
 0x17a   : > { %3473 = vsyncadd (%p4242_p13), [#allocation18], 4294963136 }
 0x17b   : > { %3475 = dma.done.wait (%p4243_p1), [#allocation21], 4112   ;;  %p4244_p3 = pmov %p4243_p1 }
 0x17c   : > { %v3995_v0 = vld [vmem:[%s523_s21] sm:$0xff]  ;;  %v3517_v3 = vmov 0.0   ;;  %v2888_v5 = vld [vmem:[#allocation8 + $0x1c] ss:$12 sps:$4 sm:$0xff]   ;;  %v3518_v25 = vmov 0   ;;  %vm3519_vm0 = vmmov 0   ;;  %v679_v41 = vlaneseq }
 0x17d   : > { %3477 = vsyncadd (%p4244_p3), [#allocation21], 4294963184  ;;  %616 = vadd.xlane.f32.xlu0 %v3995_v0  ;;  %v2884_v1 = vld [vmem:[#allocation8 + $0x4] ss:$12 sps:$4 sm:$0xff]   ;;  %v2886_v2 = vld [vmem:[#allocation8] ss:$12 sps:$4 sm:$0xff]   ;;  %2617 = vmatprep.subr.bf16.mxu1 %v3517_v3 }
 0x17e   : > { %v2887_v4 = vld [vmem:[#allocation8 + $0x8] ss:$12 sps:$4 sm:$0xff]   ;;  %v2890_v6 = vld [vmem:[#allocation8 + $0x18] ss:$12 sps:$4 sm:$0xff]   ;;  %822 = vmatprep.subr.bf16.mxu0 %v2884_v1  ;;  %v2891_v7 = vld [vmem:[#allocation8 + $0x20] ss:$12 sps:$4 sm:$0xff]   ;;  %854 = vmatprep.mubr.bf16.mxu0 %v3518_v25 }
 0x17f   : > { %v2892_v8 = vld [vmem:[#allocation8 + $0x34] ss:$12 sps:$4 sm:$0xff]   ;;  %823 = vmatpush1.bf16.msra.mxu0 %v2886_v2  ;;  %2618 = vmatpush3.bf16.msra.mxu1 %v2887_v4  ;;  %v2894_v13 = vld [vmem:[#allocation8 + $0x30] ss:$12 sps:$4 sm:$0xff]   ;;  %v2895_v14 = vld [vmem:[#allocation8 + $0x38] ss:$12 sps:$4 sm:$0xff]  }
 0x180   : > { %824 = vmatprep.subr.bf16.mxu0 %v2888_v5  ;;  %2619 = vmatprep.subr.bf16.mxu1 %v3517_v3  ;;  %v2896_v15 = vld [vmem:[#allocation8 + $0x4c] ss:$12 sps:$4 sm:$0xff]   ;;  %v2898_v16 = vld [vmem:[#allocation8 + $0x48] ss:$12 sps:$4 sm:$0xff]   ;;  %v2899_v17 = vld [vmem:[#allocation8 + $0x50] ss:$12 sps:$4 sm:$0xff]  }
 0x181   : > { %v2900_v18 = vld [vmem:[#allocation8 + $0x64] ss:$12 sps:$4 sm:$0xff]   ;;  %v2902_v19 = vld [vmem:[#allocation8 + $0x60] ss:$12 sps:$4 sm:$0xff]   ;;  %v2903_v20 = vld [vmem:[#allocation8 + $0x68] ss:$12 sps:$4 sm:$0xff]   ;;  %2633 = vmatprep.mubr.msk.bf16.mxu1 %vm3519_vm0, %v3517_v3 }
 0x182   : > { %v2904_v21 = vld [vmem:[#allocation8 + $0x7c] ss:$12 sps:$4 sm:$0xff]   ;;  %v2906_v22 = vld [vmem:[#allocation8 + $0x78] ss:$12 sps:$4 sm:$0xff]   ;;  %v2907_v23 = vld [vmem:[#allocation8 + $0x80] ss:$12 sps:$4 sm:$0xff]  }
 0x183   : > { %825 = vmatpush1.bf16.msra.mxu0 %v2890_v6  ;;  %2620 = vmatpush3.bf16.msra.mxu1 %v2891_v7  ;;  %v2908_v24 = vld [vmem:[#allocation8 + $0x94] ss:$12 sps:$4 sm:$0xff]   ;;  %v2910_v26 = vld [vmem:[#allocation8 + $0x90] ss:$12 sps:$4 sm:$0xff]   ;;  %v2911_v27 = vld [vmem:[#allocation8 + $0x98] ss:$12 sps:$4 sm:$0xff]  }
 0x184   : > { %826 = vmatprep.subr.bf16.mxu0 %v2892_v8  ;;  %2621 = vmatprep.subr.bf16.mxu1 %v3517_v3  ;;  %v2912_v28 = vld [vmem:[#allocation8 + $0xac] ss:$12 sps:$4 sm:$0xff]   ;;  %v2914_v29 = vld [vmem:[#allocation8 + $0xa8] ss:$12 sps:$4 sm:$0xff]   ;;  %v2915_v30 = vld [vmem:[#allocation8 + $0xb0] ss:$12 sps:$4 sm:$0xff]  }
 0x185   : > { %v2421_v35 = vld [vmem:[#allocation5] ss:$0 sm:$0xff]  ;;  %v2422_v37 = vld [vmem:[#allocation7] ss:$0 sm:$0xff]  ;;  %v4016_v42 = vshrl.u32 %v679_v41, 7  ;;  %vm912_vm1 = vcmask 261120  }
 0x186   : > { %v677_v44 = vld [vmem:[#allocation10] sm:$0x7]  ;;  %s3520_s1 = smov 96   ;;  %s3521_s3 = smov 32   ;;  %vm976_vm2 = vcmask 1043456   ;;  %v4039_v5 = vand.u32 127, %v679_v41 }
 0x187   : > { %827 = vmatpush1.bf16.msra.mxu0 %v2894_v13  ;;  %2622 = vmatpush3.bf16.msra.mxu1 %v2895_v14  ;;  %v685_v43 = vsub.s32 1, %v4016_v42  ;;  %v681_v45 = vsub.s32 0, %v4016_v42  ;;  %v689_v46 = vsub.s32 2, %v4016_v42  ;;  %vm960_vm4 = vcmask 64512   ;;  %s3522_s30 = smov 64   ;;  %s2536_s13 = sshll.u32 %s4232_s15, 7 }
 0x188   : > { %2623 = vmatprep.subr.bf16.mxu1 %v3517_v3  ;;  %828 = vmatprep.subr.bf16.mxu0 %v2896_v15  ;;  %vm911_vm3 = vcmp.gt.s32.totalorder %v4039_v5, %v4016_v42  ;;  %vm1369_vm5 = vcmask 523264   ;;  %vm1371_vm6 = vcmask 785408   ;;  %s613_s16 = scalar_lea.vmem [#allocation23], %s2407_s20  ;;  %s4245_s24 = sld [smem:[#allocation38_spill]] }
 0x189   : > { %v686_v47 = vrot.slane %v677_v44, %v685_v43  ;;  %v682_v48 = vrot.slane %v677_v44, %v681_v45  ;;  %v690_v53 = vrot.slane %v677_v44, %v689_v46  ;;  %s2205_s25 = sshll.u32 %s613_s16, 4  ;;  %p4246_p0 = scmp.ne.s32.totalorder %s4226_s22, 0  ;;  %s4140_s25 = int_to_ptr.vmem [resolvable:$true] %s2205_s25 }
 0x18a   : > { %s3523_s20 = smov [#allocation23]  }
 0x18b   : > { %829 = vmatpush1.bf16.msra.mxu0 %v2898_v16  ;;  %2624 = vmatpush3.bf16.msra.mxu1 %v2899_v17  ;;  %s3410_s15 = sshll.u32 %s3523_s20, 4  ;;  %s3411_s15 = int_to_ptr.vmem [resolvable:$false] %s3410_s15 }
 0x18c   : > { %2625 = vmatprep.subr.bf16.mxu1 %v3517_v3  ;;  %830 = vmatprep.subr.bf16.mxu0 %v2900_v18  ;;  %p3413_p12 = scmp.lt.s32.totalorder %s4140_s25, %s3411_s15 }
 0x18e   : > { %s4138_s21 = scalar_lea.hbm %s4245_s24, %s2536_s13 }
 0x18f   : > { %831 = vmatpush1.bf16.msra.mxu0 %v2902_v19  ;;  %2626 = vmatpush3.bf16.msra.mxu1 %v2903_v20 }
 0x190   : > { %832 = vmatprep.subr.bf16.mxu0 %v2904_v21  ;;  %2627 = vmatprep.subr.bf16.mxu1 %v3517_v3 }
 0x193   : > { %833 = vmatpush1.bf16.msra.mxu0 %v2906_v22  ;;  %2628 = vmatpush3.bf16.msra.mxu1 %v2907_v23 }
 0x194   : > { %834 = vmatprep.subr.bf16.mxu0 %v2908_v24  ;;  %2629 = vmatprep.subr.bf16.mxu1 %v3517_v3 }
 0x197   : > { %835 = vmatpush1.bf16.msra.mxu0 %v2910_v26  ;;  %2630 = vmatpush3.bf16.msra.mxu1 %v2911_v27 }
 0x198   : > { %836 = vmatprep.subr.bf16.mxu0 %v2912_v28  ;;  %2631 = vmatprep.subr.bf16.mxu1 %v3517_v3 }
 0x19b   : > { %837 = vmatpush1.bf16.msra.mxu0 %v2914_v29  ;;  %2632 = vmatpush3.bf16.msra.mxu1 %v2915_v30 }
 0x19c   : > { %2637 = vmatprep.subr.bf16.mxu1 %v3517_v3  ;;  %2661 = vmatprep.subr.bf16.mxu0 %v3517_v3 }
 0x20a   : > { %v617_v9 = vpop.xlane.xlu0 %616 }
 0x20b   : > { %v619_v10 = vmul.f32 0.0078125, %v617_v9 }
 0x20d   : > { %v620_v11 = vsub.f32 %v3995_v0, %v619_v10 }
 0x20f   : > { %v621_v12 = vmul.f32 %v620_v11, %v620_v11 }
 0x211   : > { %622 = vadd.xlane.f32.xlu0 %v621_v12 }
 0x29e   : > { %v623_v31 = vpop.xlane.xlu0 %622 }
 0x29f   : > { %v624_v32 = vmul.f32 0.0078125, %v623_v31 }
 0x2a1   : > { %v625_v33 = vadd.f32 1e-05, %v624_v32 }
 0x2a3   : > { %3004 = vrsqrt.f32 %v625_v33 }
 0x2ad   : > { %v3005_v34 = vpop.eup %3004 }
 0x2ae   : > { %v627_v36 = vmul.f32 %v3005_v34, %v620_v11 }
 0x2b0   : > { %v635_v38 = vmul.f32 %v2421_v35, %v627_v36 }
 0x2b2   : > { %v643_v39 = vadd.f32 %v2422_v37, %v635_v38 }
 0x2b4   : > { %v644_v40 = vpack.c.bf16 %v643_v39, %v643_v39 }
 0x2b6   : > { %855 = vmatmul.mubr.bf16.vlgmr.msra.gmra.mrb[0].mxu0 %v644_v40  ;;  %2634 = vmatmul.mubr.bf16.vlgmr.msra.gmra.mrb[0].mxu1 %v644_v40 }
 0x2b7   : > { %2639 = vmatprep.mubr.msk.bf16.mxu1 %vm3519_vm0, %v3517_v3  ;;  %2663 = vmatprep.mubr.msk.bf16.mxu0 %vm3519_vm0, %v3517_v3 }
 0x389   : > { %v856_v49 = vpop.f32.mrb[0].mxu0  ;;  %v897_v50 = vpop.f32.mrb[0].mxu1 }
 0x38a   : > { %v858_v51 = vpop.f32.mrb[1].mxu0  ;;  %v2635_v52 = vpop.f32.mrb[1].mxu1  ;;  %v857_v59 = vadd.f32 %v856_v49, %v682_v48  ;;  %v898_v61 = vadd.f32 %v897_v50, %v690_v53 }
 0x38b   : > { %v859_v54 = vadd.f32 %v858_v51, %v686_v47  ;;  %v860_v55 = vpop.f32.mrb[2].mxu0  ;;  %v900_v56 = vpop.f32.mrb[2].mxu1 }
 0x38c   : > { %v861_v57 = vpop.f32.mrb[3].mxu0  ;;  %v2636_v58 = vpop.f32.mrb[3].mxu1  ;;  %v903_v63 = vmul.f32 0.17677669, %v857_v59  ;;  %v4030_v1 = vpack.c.bf16 %v898_v61, %v898_v61 }
 0x38d   : > { %v905_v60 = vpack.c.bf16 %v859_v54, %v859_v54 }
 0x38e   : > { %v904_v2 = vpack.c.bf16 %v903_v63, %v903_v63  ;;  %v978_v4 = vsel %vm976_vm2, %v4030_v1, 0 }
 0x38f   : > { %1024 = vrot.lane.b32.xlu0 %v905_v60, %s3520_s1  ;;  %v917_v62 = vsel %vm912_vm1, %v905_v60, 0 }
 0x390   : > { %2638 = vmatpush3.bf16.xpose.msra.mxu1 %v917_v62 }
 0x391   : > { %2643 = vmatprep.subr.bf16.mxu1 %v3517_v3 }
 0x393   : > { %1247 = vrot.lane.b32.xlu0 %v905_v60, %s3521_s3 }
 0x397   : > { %2640 = vmatmul.mubr.msk.bf16.vlgmr.msra.gmra.mrb[4].mxu1 %vm912_vm1, %v904_v2 }
 0x398   : > { %2644 = vmatpush3.bf16.msra.mxu1 %v978_v4  ;;  %2645 = vmatprep.mubr.msk.bf16.mxu1 %vm3519_vm0, %v3517_v3 }
 0x399   : > { %2649 = vmatprep.subr.bf16.mxu1 %v3517_v3 }
 0x401   : > { %v1025_v19 = vpop.permute.xlu0 %1024 }
 0x402   : > { %v1030_v27 = vsel %vm912_vm1, %v1025_v19, 0 }
 0x405   : > { %v1248_v24 = vpop.permute.xlu0 %1247 }
 0x406   : > { %v1253_v29 = vsel %vm912_vm1, %v1248_v24, 0 }
 0x46a   : > { %v953_v6 = vpop.f32.mrb[4].mxu1 }
 0x46b   : > { %v959_v7 = vsel %vm911_vm3, -1e+30, %v953_v6  ;;  %v2641_v8 = vpop.f32.mrb[5].mxu1 }
 0x46c   : > { %v956_v9 = vpop.f32.mrb[6].mxu1  ;;  %v961_v10 = vsel %vm960_vm4, %v959_v7, -inf }
 0x46d   : > { %962 = vmax.xlane.f32.xlu1 %v961_v10  ;;  %v2642_v11 = vpop.f32.mrb[7].mxu1 }
 0x4fa   : > { %v963_v12 = vpop.xlane.xlu1 %962 }
 0x4fb   : > { %v964_v13 = vsub.f32 %v959_v7, %v963_v12 }
 0x4fd   : > { %v965_v14 = vmul.f32 1.442695, %v964_v13 }
 0x4ff   : > { %3006 = vpow2.f32 %v965_v14 }
 0x509   : > { %v3007_v15 = vpop.eup %3006 }
 0x50a   : > { %v967_v16 = vsel %vm960_vm4, %v3007_v15, 0.0 }
 0x50b   : > { %968 = vadd.xlane.f32.xlu1 %v967_v16 }
 0x51c   : > { %1021 = vrot.lane.b32.xlu1 %v904_v2, %s3520_s1 }
 0x520   : > { %1136 = vrot.lane.b32.xlu1 %v905_v60, %s3522_s30 }
 0x524   : > { %1134 = vrot.lane.b32.xlu1 %v904_v2, %s3522_s30 }
 0x528   : > { %1245 = vrot.lane.b32.xlu1 %v904_v2, %s3521_s3 }
 0x598   : > { %v969_v17 = vpop.xlane.xlu1 %968 }
 0x599   : > { %3008 = vrcp.f32 %v969_v17 }
 0x59c   : > { %v1022_v18 = vpop.permute.xlu1 %1021 }
 0x5a0   : > { %v1137_v20 = vpop.permute.xlu1 %1136 }
 0x5a1   : > { %v1142_v21 = vsel %vm912_vm1, %v1137_v20, 0 }
 0x5a2   : > { %2662 = vmatpush3.bf16.xpose.msra.mxu0 %v1142_v21 }
 0x5a3   : > { %v3009_v22 = vpop.eup %3008  ;;  %2673 = vmatprep.subr.bf16.mxu0 %v3517_v3 }
 0x5a4   : > { %v971_v23 = vmul.f32 %v3009_v22, %v3007_v15  ;;  %v1135_v28 = vpop.permute.xlu1 %1134 }
 0x5a6   : > { %v972_v26 = vpack.c.bf16 %v971_v23, %v971_v23 }
 0x5a8   : > { %2646 = vmatmul.mubr.msk.bf16.vlgmr.msra.gmra.mrb[8].mxu1 %vm960_vm4, %v972_v26  ;;  %v1246_v30 = vpop.permute.xlu1 %1245 }
 0x5a9   : > { %2650 = vmatpush3.bf16.xpose.msra.mxu1 %v1030_v27  ;;  %2664 = vmatmul.mubr.msk.bf16.vlgmr.msra.gmra.mrb[4].mxu0 %vm912_vm1, %v1135_v28 }
 0x5aa   : > { %2674 = vmatpush3.bf16.xpose.msra.mxu0 %v1253_v29  ;;  %2651 = vmatprep.mubr.msk.bf16.mxu1 %vm3519_vm0, %v3517_v3  ;;  %v2916_v29 = vld [vmem:[#allocation11] sm:$0xff]  }
 0x5ab   : > { %2675 = vmatprep.mubr.msk.bf16.mxu0 %vm3519_vm0, %v3517_v3  ;;  %2655 = vmatprep.subr.bf16.mxu1 %v3517_v3 }
 0x5ac   : > { %2685 = vmatprep.subr.bf16.mxu0 %v3517_v3 }
 0x5b0   : > { %2652 = vmatmul.mubr.msk.bf16.vlgmr.msra.gmra.mrb[12].mxu1 %vm912_vm1, %v1022_v18 }
 0x5b1   : > { %2676 = vmatmul.mubr.msk.bf16.vlgmr.msra.gmra.mrb[8].mxu0 %vm912_vm1, %v1246_v30  ;;  %2657 = vmatprep.mubr.msk.bf16.mxu1 %vm3519_vm0, %v3517_v3  ;;  %v2917_v30 = vld [vmem:[#allocation11 + $0x8] sm:$0xff]  }
 0x5b2   : > { %2701 = vmatprep.mubr.msk.bf16.mxu0 %vm3519_vm0, %v3517_v3  ;;  %2686 = vmatpush3.bf16.msra.mxu0 %v2916_v29  ;;  %v2954_v29 = vld [vmem:[#allocation17 + $0xa0] ss:$16 sps:$4 sm:$0xff]  }
 0x5b3   : > { %2687 = vmatprep.subr.bf16.mxu0 %v3517_v3 }
 0x5b6   : > { %2688 = vmatpush3.bf16.msra.mxu0 %v2917_v30  ;;  %v2957_v30 = vld [vmem:[#allocation17 + $0xa8] ss:$16 sps:$4 sm:$0xff]  }
 0x5b7   : > { %2689 = vmatprep.subr.bf16.mxu0 %v3517_v3 }
 0x67b   : > { %v4070_v31 = vpop.f32.mrb[8].mxu1 }
 0x67c   : > { %v2647_v32 = vpop.f32.mrb[9].mxu1  ;;  %v1178_v33 = vpop.f32.mrb[4].mxu0 }
 0x67d   : > { %v1184_v34 = vsel %vm911_vm3, -1e+30, %v1178_v33  ;;  %v1017_v35 = vpop.f32.mrb[10].mxu1  ;;  %v2665_v36 = vpop.f32.mrb[5].mxu0  ;;  %v2918_v32 = vld [vmem:[#allocation11 + $0x10] sm:$0xff]   ;;  %v2919_v33 = vld [vmem:[#allocation11 + $0x18] sm:$0xff]  }
 0x67e   : > { %v2648_v37 = vpop.f32.mrb[11].mxu1  ;;  %v1181_v38 = vpop.f32.mrb[6].mxu0  ;;  %v1185_v39 = vsel %vm960_vm4, %v1184_v34, -inf  ;;  %2690 = vmatpush3.bf16.msra.mxu0 %v2918_v32  ;;  %v2921_v35 = vld [vmem:[#allocation11 + $0x28] sm:$0xff]   ;;  %v2922_v36 = vld [vmem:[#allocation11 + $0x30] sm:$0xff]  }
 0x67f   : > { %1186 = vmax.xlane.f32.xlu1 %v1185_v39  ;;  %v2666_v40 = vpop.f32.mrb[7].mxu0  ;;  %2691 = vmatprep.subr.bf16.mxu0 %v3517_v3  ;;  %v2962_v32 = vld [vmem:[#allocation17 + $0xc4] ss:$16 sps:$4 sm:$0xff]  }
 0x682   : > { %2692 = vmatpush3.bf16.msra.mxu0 %v2919_v33  ;;  %v2965_v33 = vld [vmem:[#allocation17 + $0xcc] ss:$16 sps:$4 sm:$0xff]  }
 0x683   : > { %v1066_v41 = vpop.f32.mrb[12].mxu1  ;;  %2693 = vmatprep.subr.bf16.mxu0 %v3517_v3 }
 0x684   : > { %v1072_v44 = vsel %vm911_vm3, -1e+30, %v1066_v41  ;;  %v2653_v47 = vpop.f32.mrb[13].mxu1  ;;  %v1289_v48 = vpop.f32.mrb[8].mxu0  ;;  %v2923_v41 = vld [vmem:[#allocation11 + $0x38] sm:$0xff]  }
 0x685   : > { %v1069_v49 = vpop.f32.mrb[14].mxu1  ;;  %v2677_v50 = vpop.f32.mrb[9].mxu0  ;;  %v1073_v51 = vsel %vm960_vm4, %v1072_v44, -inf  ;;  %v1295_v52 = vsel %vm911_vm3, -1e+30, %v1289_v48 }
 0x686   : > { %v1292_v53 = vpop.f32.mrb[10].mxu0  ;;  %1074 = vmax.xlane.f32.xlu0 %v1073_v51  ;;  %v2654_v54 = vpop.f32.mrb[15].mxu1  ;;  %v1296_v56 = vsel %vm960_vm4, %v1295_v52, -inf }
 0x687   : > { %v2678_v55 = vpop.f32.mrb[11].mxu0 }
 0x68a   : > { %1297 = vmax.xlane.f32.xlu0 %v1296_v56 }
 0x70c   : > { %v1187_v57 = vpop.xlane.xlu1 %1186 }
 0x70d   : > { %v1188_v58 = vsub.f32 %v1184_v34, %v1187_v57  ;;  %v2920_v34 = vld [vmem:[#allocation11 + $0x20] sm:$0xff]  }
 0x70e   : > { %2694 = vmatpush3.bf16.msra.mxu0 %v2920_v34  ;;  %v2960_v34 = vld [vmem:[#allocation17 + $0xc0] ss:$16 sps:$4 sm:$0xff]  }
 0x70f   : > { %v1189_v59 = vmul.f32 1.442695, %v1188_v58  ;;  %2695 = vmatprep.subr.bf16.mxu0 %v3517_v3 }
 0x711   : > { %3010 = vpow2.f32 %v1189_v59 }
 0x712   : > { %2696 = vmatpush3.bf16.msra.mxu0 %v2921_v35  ;;  %v2963_v35 = vld [vmem:[#allocation17 + $0xc8] ss:$16 sps:$4 sm:$0xff]  }
 0x713   : > { %v1075_v60 = vpop.xlane.xlu0 %1074  ;;  %2697 = vmatprep.subr.bf16.mxu0 %v3517_v3 }
 0x714   : > { %v1076_v61 = vsub.f32 %v1072_v44, %v1075_v60  ;;  %v2455_v60 = vld [vmem:[#allocation13] ss:$0 sm:$0xff] }
 0x716   : > { %v1077_v62 = vmul.f32 1.442695, %v1076_v61  ;;  %2698 = vmatpush3.bf16.msra.mxu0 %v2922_v36  ;;  %v2968_v36 = vld [vmem:[#allocation17 + $0xe4] ss:$16 sps:$4 sm:$0xff]  }
 0x717   : > { %v1298_v63 = vpop.xlane.xlu0 %1297  ;;  %2699 = vmatprep.subr.bf16.mxu0 %v3517_v3 }
 0x718   : > { %3012 = vpow2.f32 %v1077_v62  ;;  %v1299_v2 = vsub.f32 %v1295_v52, %v1298_v63 }
 0x71a   : > { %v1300_v4 = vmul.f32 1.442695, %v1299_v2  ;;  %2700 = vmatpush3.bf16.msra.mxu0 %v2923_v41 }
 0x71b   : > { %v3011_v5 = vpop.eup %3010 }
 0x71c   : > { %3014 = vpow2.f32 %v1300_v4  ;;  %v1191_v6 = vsel %vm960_vm4, %v3011_v5, 0.0 }
 0x71d   : > { %1192 = vadd.xlane.f32.xlu0 %v1191_v6  ;;  %v2924_v6 = vld [vmem:[#allocation17] ss:$16 sps:$4 sm:$0xff]  }
 0x722   : > { %v3013_v7 = vpop.eup %3012 }
 0x723   : > { %v1079_v8 = vsel %vm960_vm4, %v3013_v7, 0.0 }
 0x724   : > { %1080 = vadd.xlane.f32.xlu0 %v1079_v8  ;;  %v2929_v8 = vld [vmem:[#allocation17 + $0xc] ss:$16 sps:$4 sm:$0xff]  }
 0x725   : > { %1769 = vmatprep.subr.bf16.mxu0 %v2929_v8  ;;  %v2988_v8 = vld [vmem:[#allocation20 + $0x60] sm:$0xff]  }
 0x726   : > { %v3015_v9 = vpop.eup %3014 }
 0x727   : > { %v1302_v10 = vsel %vm960_vm4, %v3015_v9, 0.0 }
 0x728   : > { %1303 = vadd.xlane.f32.xlu1 %v1302_v10  ;;  %v2935_v10 = vld [vmem:[#allocation17 + $0x2c] ss:$16 sps:$4 sm:$0xff]  }
 0x739   : > { %1197 = vrot.lane.b32.xlu1 %v4030_v1, %s3522_s30 }
 0x73a   : > { %1086 = vrot.lane.b32.xlu0 %v4030_v1, %s3520_s1 }
 0x73d   : > { %1308 = vrot.lane.b32.xlu1 %v4030_v1, %s3521_s3 }
 0x7aa   : > { %v1193_v11 = vpop.xlane.xlu0 %1192 }
 0x7b1   : > { %v1081_v12 = vpop.xlane.xlu0 %1080 }
 0x7b2   : > { %3016 = vrcp.f32 %v1081_v12  ;;  %v2938_v12 = vld [vmem:[#allocation17 + $0x44] ss:$16 sps:$4 sm:$0xff]  }
 0x7b3   : > { %3018 = vrcp.f32 %v1193_v11  ;;  %v2933_v11 = vld [vmem:[#allocation17 + $0x28] ss:$16 sps:$4 sm:$0xff]  }
 0x7b5   : > { %v1087_v13 = vpop.permute.xlu0 %1086  ;;  %v1304_v15 = vpop.xlane.xlu1 %1303 }
 0x7b6   : > { %v1092_v14 = vsel %vm976_vm2, %v1087_v13, 0  ;;  %3020 = vrcp.f32 %v1304_v15  ;;  %v2936_v13 = vld [vmem:[#allocation17 + $0x40] ss:$16 sps:$4 sm:$0xff]  }
 0x7b7   : > { %2656 = vmatpush3.bf16.msra.mxu1 %v1092_v14  ;;  %v2939_v14 = vld [vmem:[#allocation17 + $0x48] ss:$16 sps:$4 sm:$0xff]  }
 0x7b8   : > { %2667 = vmatprep.subr.bf16.mxu1 %v3517_v3 }
 0x7b9   : > { %v1198_v18 = vpop.permute.xlu1 %1197 }
 0x7ba   : > { %v1203_v21 = vsel %vm976_vm2, %v1198_v18, 0 }
 0x7bc   : > { %v3017_v16 = vpop.eup %3016 }
 0x7bd   : > { %v1083_v17 = vmul.f32 %v3017_v16, %v3013_v7  ;;  %v3019_v20 = vpop.eup %3018  ;;  %v1309_v22 = vpop.permute.xlu1 %1308  ;;  %v2927_v7 = vld [vmem:[#allocation17 + $0x8] ss:$16 sps:$4 sm:$0xff]  }
 0x7be   : > { %v1195_v1 = vmul.f32 %v3019_v20, %v3011_v5  ;;  %v1314_v26 = vsel %vm976_vm2, %v1309_v22, 0  ;;  %v2947_v20 = vld [vmem:[#allocation17 + $0x6c] ss:$16 sps:$4 sm:$0xff]   ;;  %v2950_v22 = vld [vmem:[#allocation17 + $0x84] ss:$16 sps:$4 sm:$0xff]  }
 0x7bf   : > { %v1084_v19 = vpack.c.bf16 %v1083_v17, %v1083_v17 }
 0x7c0   : > { %v1196_v23 = vpack.c.bf16 %v1195_v1, %v1195_v1  ;;  %v3021_v24 = vpop.eup %3020  ;;  %v2945_v1 = vld [vmem:[#allocation17 + $0x68] ss:$16 sps:$4 sm:$0xff]  }
 0x7c1   : > { %2658 = vmatmul.mubr.msk.bf16.vlgmr.msra.gmra.mrb[16].mxu1 %vm960_vm4, %v1084_v19  ;;  %v1306_v27 = vmul.f32 %v3021_v24, %v3015_v9  ;;  %v2932_v9 = vld [vmem:[#allocation17 + $0x24] ss:$16 sps:$4 sm:$0xff]   ;;  %v2948_v24 = vld [vmem:[#allocation17 + $0x80] ss:$16 sps:$4 sm:$0xff]  }
 0x7c2   : > { %2668 = vmatpush3.bf16.msra.mxu1 %v1203_v21  ;;  %2669 = vmatprep.mubr.msk.bf16.mxu1 %vm3519_vm0, %v3517_v3  ;;  %v2944_v19 = vld [vmem:[#allocation17 + $0x64] ss:$16 sps:$4 sm:$0xff]   ;;  %v2942_v21 = vld [vmem:[#allocation17 + $0x60] ss:$16 sps:$4 sm:$0xff]  }
 0x7c3   : > { %2679 = vmatprep.subr.bf16.mxu1 %v3517_v3  ;;  %v1307_v28 = vpack.c.bf16 %v1306_v27, %v1306_v27  ;;  %v2956_v27 = vld [vmem:[#allocation17 + $0xa4] ss:$16 sps:$4 sm:$0xff]  }
 0x7c9   : > { %2670 = vmatmul.mubr.msk.bf16.vlgmr.msra.gmra.mrb[20].mxu1 %vm960_vm4, %v1196_v23  ;;  %v2953_v23 = vld [vmem:[#allocation17 + $0x8c] ss:$16 sps:$4 sm:$0xff]  }
 0x7ca   : > { %2680 = vmatpush3.bf16.msra.mxu1 %v1314_v26  ;;  %2681 = vmatprep.mubr.msk.bf16.mxu1 %vm3519_vm0, %v3517_v3  ;;  %v2951_v26 = vld [vmem:[#allocation17 + $0x88] ss:$16 sps:$4 sm:$0xff]  }
 0x7d1   : > { %2682 = vmatmul.mubr.msk.bf16.vlgmr.msra.gmra.mrb[24].mxu1 %vm960_vm4, %v1307_v28  ;;  %v2959_v28 = vld [vmem:[#allocation17 + $0xac] ss:$16 sps:$4 sm:$0xff]  }
 0x7d2   : > { %1760 = vmatprep.mubr.bf16.mxu1 %v3518_v25 }
 0x894   : > { %v1128_v37 = vpop.f32.mrb[16].mxu1 }
 0x895   : > { %1357 = vrot.lane.b32.xlu1 %v1128_v37, %s3521_s3  ;;  %v2659_v38 = vpop.f32.mrb[17].mxu1  ;;  %v2971_v37 = vld [vmem:[#allocation17 + $0xec] ss:$16 sps:$4 sm:$0xff]   ;;  %s3406_s3 = scalar_lea.vmem %s4140_s25, 128 }
 0x896   : > { %v1131_v39 = vpop.f32.mrb[18].mxu1  ;;  %v2966_v38 = vld [vmem:[#allocation17 + $0xe0] ss:$16 sps:$4 sm:$0xff]   ;;  %p3407_p2 = scmp.ne.s32.totalorder %s4140_s25, %s3406_s3 }
 0x897   : > { %v2660_v40 = vpop.f32.mrb[19].mxu1  ;;  %v2969_v39 = vld [vmem:[#allocation17 + $0xe8] ss:$16 sps:$4 sm:$0xff]  }
 0x898   : > { %p3408_p10 = pnand %p3407_p2, %p4246_p0 }
 0x89a   : > { %p3409_p11 = pneg %p3408_p10 }
 0x89c   : > { %v1239_v44 = vpop.f32.mrb[20].mxu1 }
 0x89d   : > { %1361 = vrot.lane.b32.xlu0 %v1239_v44, %s3522_s30  ;;  %v2671_v47 = vpop.f32.mrb[21].mxu1  ;;  %s3412_s30 = scalar_lea.vmem %s3411_s15, 256 }
 0x89e   : > { %v1242_v48 = vpop.f32.mrb[22].mxu1  ;;  %p3414_p8 = scmp.lt.s32.totalorder %s3412_s30, %s3406_s3 }
 0x89f   : > { %v2672_v49 = vpop.f32.mrb[23].mxu1  ;;  %v2464_v48 = vld [vmem:[#allocation14] ss:$0 sm:$0xff] }
 0x8a0   : > { %p3415_p5 = por %p3414_p8, %p3413_p12 }
 0x8a2   : > { %p3416_p7 = pnand %p3415_p5, %p3409_p11 }
 0x8a4   : > { %v1350_v50 = vpop.f32.mrb[24].mxu1 }
 0x8a5   : > { %1365 = vrot.lane.b32.xlu1 %v1350_v50, %s3520_s1  ;;  %v2683_v51 = vpop.f32.mrb[25].mxu1  ;;  %v2465_v50 = vld [vmem:[#allocation16] ss:$0 sm:$0xff]  ;;  %s2192_s1 = scalar_lea.sflag [#allocation4], %s3961_s17 }
 0x8a6   : > { %v1353_v52 = vpop.f32.mrb[26].mxu1 }
 0x8a7   : > { %v2684_v53 = vpop.f32.mrb[27].mxu1 }
 0x907   : > { %v1358_v54 = vpop.permute.xlu1 %1357 }
 0x908   : > { %v1368_v3 = vsel %vm912_vm1, %v4070_v31, %v1358_v54  ;;  %v2926_v31 = vld [vmem:[#allocation17 + $0x4] ss:$16 sps:$4 sm:$0xff]  }
 0x909   : > { %1728 = vmatprep.subr.bf16.mxu1 %v2926_v31  ;;  %v2972_v54 = vld [vmem:[#allocation20 + $0x40] sm:$0xff]   ;;  %v2986_v31 = vld [vmem:[#allocation20 + $0x18] sm:$0xff]  }
 0x90a   : > { %1729 = vmatpush1.bf16.msra.mxu1 %v2924_v6  ;;  %v2985_v6 = vld [vmem:[#allocation20 + $0xd8] sm:$0xff]  }
 0x90b   : > { %1730 = vmatprep.subr.bf16.mxu1 %v2932_v9  ;;  %v2989_v9 = vld [vmem:[#allocation20 + $0xe0] sm:$0xff]  }
 0x90f   : > { %v1362_v55 = vpop.permute.xlu0 %1361 }
 0x910   : > { %v1370_v56 = vsel %vm1369_vm5, %v1368_v3, %v1362_v55  ;;  %v2973_v55 = vld [vmem:[#allocation20 + $0xc0] sm:$0xff]  }
 0x911   : > { %v2974_v3 = vld [vmem:[#allocation20] sm:$0xff]  }
 0x917   : > { %v1366_v57 = vpop.permute.xlu1 %1365 }
 0x918   : > { %v1372_v58 = vsel %vm1371_vm6, %v1370_v56, %v1366_v57  ;;  %v2975_v56 = vld [vmem:[#allocation20 + $0x80] sm:$0xff]   ;;  %v2976_v57 = vld [vmem:[#allocation20 + $0x48] sm:$0xff]  }
 0x919   : > { %v1373_v59 = vpack.c.bf16 %v1372_v58, %v1372_v58  ;;  %v2977_v58 = vld [vmem:[#allocation20 + $0xc8] sm:$0xff]  }
 0x91b   : > { %2702 = vmatmul.mubr.bf16.vlgmr.msra.gmra.mrb[12].mxu0 %v1373_v59  ;;  %v2978_v59 = vld [vmem:[#allocation20 + $0x8] sm:$0xff]  }
 0x91c   : > { %1801 = vmatprep.mubr.bf16.mxu0 %v3518_v25  ;;  %v2930_v25 = vld [vmem:[#allocation17 + $0x20] ss:$16 sps:$4 sm:$0xff]   ;;  %1770 = vmatpush1.bf16.msra.mxu0 %v2927_v7 }
 0x91d   : > { %1771 = vmatprep.subr.bf16.mxu0 %v2935_v10  ;;  %1731 = vmatpush1.bf16.msra.mxu1 %v2930_v25  ;;  %v2987_v7 = vld [vmem:[#allocation20 + $0x98] sm:$0xff]   ;;  %v2990_v10 = vld [vmem:[#allocation20 + $0x20] sm:$0xff]  }
 0x91e   : > { %1732 = vmatprep.subr.bf16.mxu1 %v2938_v12  ;;  %v2991_v25 = vld [vmem:[#allocation20 + $0xa0] sm:$0xff]   ;;  %v2993_v12 = vld [vmem:[#allocation20 + $0xe8] sm:$0xff]  }
 0x920   : > { %1772 = vmatpush1.bf16.msra.mxu0 %v2933_v11  ;;  %v2992_v11 = vld [vmem:[#allocation20 + $0x68] sm:$0xff]  }
 0x921   : > { %1733 = vmatpush1.bf16.msra.mxu1 %v2936_v13  ;;  %v2995_v13 = vld [vmem:[#allocation20 + $0xa8] sm:$0xff]  }
 0x922   : > { %1734 = vmatprep.subr.bf16.mxu1 %v2944_v19  ;;  %v3001_v19 = vld [vmem:[#allocation20 + $0xf8] sm:$0xff]  }
 0x925   : > { %1735 = vmatpush1.bf16.msra.mxu1 %v2942_v21  ;;  %v3003_v21 = vld [vmem:[#allocation20 + $0xb8] sm:$0xff]  }
 0x926   : > { %1736 = vmatprep.subr.bf16.mxu1 %v2950_v22  ;;  %v1562_v22 = vsub.s32 3, %v4016_v42 }
 0x929   : > { %1737 = vmatpush1.bf16.msra.mxu1 %v2948_v24 }
 0x92a   : > { %1738 = vmatprep.subr.bf16.mxu1 %v2956_v27 }
 0x92d   : > { %1739 = vmatpush1.bf16.msra.mxu1 %v2954_v29 }
 0x92e   : > { %1740 = vmatprep.subr.bf16.mxu1 %v2962_v32 }
 0x931   : > { %1741 = vmatpush1.bf16.msra.mxu1 %v2960_v34 }
 0x932   : > { %1742 = vmatprep.subr.bf16.mxu1 %v2968_v36 }
 0x935   : > { %1743 = vmatpush1.bf16.msra.mxu1 %v2966_v38 }
 0x936   : > { %2573 = vmatprep.subr.bf16.mxu1 %v2972_v54 }
 0x9ee   : > { %v1479_v61 = vpop.f32.mrb[12].mxu0 }
 0x9ef   : > { %v1480_v62 = vadd.f32 %v2455_v60, %v1479_v61  ;;  %v2703_v63 = vpop.f32.mrb[13].mxu0  ;;  %v2979_v60 = vld [vmem:[#allocation20 + $0x88] sm:$0xff]   ;;  %v2980_v61 = vld [vmem:[#allocation20 + $0x50] sm:$0xff]  }
 0x9f0   : > { %v1482_v2 = vpop.f32.mrb[14].mxu0  ;;  %v2982_v63 = vld [vmem:[#allocation20 + $0x10] sm:$0xff]  }
 0x9f1   : > { %v4120_v4 = vadd.f32 %v1480_v62, %v3995_v0  ;;  %v2704_v5 = vpop.f32.mrb[15].mxu0  ;;  %v2941_v0 = vld [vmem:[#allocation17 + $0x4c] ss:$16 sps:$4 sm:$0xff]   ;;  %v2981_v62 = vld [vmem:[#allocation20 + $0xd0] sm:$0xff]  }
 0x9f2   : > { %1773 = vmatprep.subr.bf16.mxu0 %v2941_v0  ;;  %v2983_v2 = vld [vmem:[#allocation20 + $0x90] sm:$0xff]   ;;  %v2984_v5 = vld [vmem:[#allocation20 + $0x58] sm:$0xff]   ;;  %v2994_v0 = vld [vmem:[#allocation20 + $0x28] sm:$0xff]  }
 0x9f3   : > { %1486 = vadd.xlane.f32.xlu0 %v4120_v4  ;;  %1774 = vmatpush1.bf16.msra.mxu0 %v2939_v14  ;;  %v2996_v14 = vld [vmem:[#allocation20 + $0x70] sm:$0xff]  }
 0x9f4   : > { %1775 = vmatprep.subr.bf16.mxu0 %v2947_v20  ;;  %v3002_v20 = vld [vmem:[#allocation20 + $0x38] sm:$0xff]  }
 0x9f7   : > { %1776 = vmatpush1.bf16.msra.mxu0 %v2945_v1  ;;  %v1546_v1 = vld [vmem:[#allocation19] sm:$0xf] }
 0x9f8   : > { %1777 = vmatprep.subr.bf16.mxu0 %v2953_v23  ;;  %v1551_v23 = vrot.slane %v1546_v1, %v681_v45  ;;  %v1559_v24 = vrot.slane %v1546_v1, %v689_v46  ;;  %v1563_v27 = vrot.slane %v1546_v1, %v1562_v22 }
 0x9fb   : > { %1778 = vmatpush1.bf16.msra.mxu0 %v2951_v26  ;;  %v1555_v26 = vrot.slane %v1546_v1, %v685_v43 }
 0x9fc   : > { %1779 = vmatprep.subr.bf16.mxu0 %v2959_v28 }
 0x9ff   : > { %1780 = vmatpush1.bf16.msra.mxu0 %v2957_v30 }
 0xa00   : > { %1781 = vmatprep.subr.bf16.mxu0 %v2965_v33 }
 0xa03   : > { %1782 = vmatpush1.bf16.msra.mxu0 %v2963_v35 }
 0xa04   : > { %1783 = vmatprep.subr.bf16.mxu0 %v2971_v37 }
 0xa07   : > { %1784 = vmatpush1.bf16.msra.mxu0 %v2969_v39 }
 0xa08   : > { %2595 = vmatprep.subr.bf16.mxu0 %v2973_v55 }
 0xa80   : > { %v1487_v15 = vpop.xlane.xlu0 %1486 }
 0xa81   : > { %v1488_v16 = vmul.f32 0.0078125, %v1487_v15  ;;  %v2997_v15 = vld [vmem:[#allocation20 + $0xf0] sm:$0xff]  }
 0xa83   : > { %v1489_v17 = vsub.f32 %v4120_v4, %v1488_v16  ;;  %v2998_v16 = vld [vmem:[#allocation20 + $0x30] sm:$0xff]  }
 0xa85   : > { %v1490_v18 = vmul.f32 %v1489_v17, %v1489_v17 }
 0xa87   : > { %1491 = vadd.xlane.f32.xlu1 %v1490_v18  ;;  %v3000_v18 = vld [vmem:[#allocation20 + $0x78] sm:$0xff]  }
 0xb14   : > { %v1492_v40 = vpop.xlane.xlu1 %1491 }
 0xb15   : > { %v1493_v41 = vmul.f32 0.0078125, %v1492_v40 }
 0xb17   : > { %v1494_v44 = vadd.f32 1e-05, %v1493_v41 }
 0xb19   : > { %3022 = vrsqrt.f32 %v1494_v44 }
 0xb23   : > { %v3023_v47 = vpop.eup %3022 }
 0xb24   : > { %v1496_v49 = vmul.f32 %v3023_v47, %v1489_v17  ;;  %v2999_v17 = vld [vmem:[#allocation20 + $0xb0] sm:$0xff]  }
 0xb26   : > { %v1504_v51 = vmul.f32 %v2464_v48, %v1496_v49 }
 0xb28   : > { %v1512_v52 = vadd.f32 %v2465_v50, %v1504_v51 }
 0xb2a   : > { %v1513_v53 = vpack.c.bf16 %v1512_v52, %v1512_v52 }
 0xb2c   : > { %1761 = vmatmul.mubr.bf16.vlgmr.msra.gmra.mrb[28].mxu1 %v1513_v53  ;;  %1802 = vmatmul.mubr.bf16.vlgmr.msra.gmra.mrb[16].mxu0 %v1513_v53 }
 0xb2d   : > { %2574 = vmatpush3.bf16.msra.mxu1 %v2974_v3  ;;  %2596 = vmatpush3.bf16.msra.mxu0 %v2975_v56 }
 0xb2e   : > { %2575 = vmatprep.subr.bf16.mxu1 %v2976_v57  ;;  %2597 = vmatprep.subr.bf16.mxu0 %v2977_v58 }
 0xb31   : > { %2576 = vmatpush3.bf16.msra.mxu1 %v2978_v59  ;;  %2598 = vmatpush3.bf16.msra.mxu0 %v2979_v60 }
 0xb32   : > { %2577 = vmatprep.subr.bf16.mxu1 %v2980_v61  ;;  %2599 = vmatprep.subr.bf16.mxu0 %v2981_v62 }
 0xb35   : > { %2578 = vmatpush3.bf16.msra.mxu1 %v2982_v63  ;;  %2600 = vmatpush3.bf16.msra.mxu0 %v2983_v2 }
 0xb36   : > { %2579 = vmatprep.subr.bf16.mxu1 %v2984_v5  ;;  %2601 = vmatprep.subr.bf16.mxu0 %v2985_v6 }
 0xb39   : > { %2580 = vmatpush3.bf16.msra.mxu1 %v2986_v31  ;;  %2602 = vmatpush3.bf16.msra.mxu0 %v2987_v7 }
 0xb3a   : > { %2581 = vmatprep.subr.bf16.mxu1 %v2988_v8  ;;  %2603 = vmatprep.subr.bf16.mxu0 %v2989_v9  ;;  %v2502_v9 = vld [vmem:[#allocation22] ss:$0 sm:$0xff] }
 0xb3d   : > { %2582 = vmatpush3.bf16.msra.mxu1 %v2990_v10  ;;  %2604 = vmatpush3.bf16.msra.mxu0 %v2991_v25 }
 0xb3e   : > { %2583 = vmatprep.subr.bf16.mxu1 %v2992_v11  ;;  %2605 = vmatprep.subr.bf16.mxu0 %v2993_v12 }
 0xb41   : > { %2584 = vmatpush3.bf16.msra.mxu1 %v2994_v0  ;;  %2606 = vmatpush3.bf16.msra.mxu0 %v2995_v13 }
 0xb42   : > { %2585 = vmatprep.subr.bf16.mxu1 %v2996_v14  ;;  %2607 = vmatprep.subr.bf16.mxu0 %v2997_v15 }
 0xb45   : > { %2586 = vmatpush3.bf16.msra.mxu1 %v2998_v16  ;;  %2608 = vmatpush3.bf16.msra.mxu0 %v2999_v17 }
 0xb46   : > { %2587 = vmatprep.subr.bf16.mxu1 %v3000_v18  ;;  %2609 = vmatprep.subr.bf16.mxu0 %v3001_v19 }
 0xb49   : > { %2588 = vmatpush3.bf16.msra.mxu1 %v3002_v20  ;;  %2610 = vmatpush3.bf16.msra.mxu0 %v3003_v21 }
 0xbff   : > { %v1762_v28 = vpop.f32.mrb[28].mxu1  ;;  %v1803_v29 = vpop.f32.mrb[16].mxu0 }
 0xc00   : > { %v1763_v30 = vadd.f32 %v1762_v28, %v1551_v23  ;;  %v1804_v32 = vadd.f32 %v1803_v29, %v1559_v24  ;;  %v1764_v33 = vpop.f32.mrb[29].mxu1  ;;  %v1805_v34 = vpop.f32.mrb[17].mxu0 }
 0xc01   : > { %v1765_v35 = vadd.f32 %v1764_v33, %v1555_v26  ;;  %v1806_v36 = vadd.f32 %v1805_v34, %v1563_v27  ;;  %v1766_v37 = vpop.f32.mrb[30].mxu1  ;;  %v1807_v38 = vpop.f32.mrb[18].mxu0 }
 0xc02   : > { %v2498_v39 = vmul.f32 -1.702, %v1763_v30  ;;  %v2500_v40 = vmul.f32 -1.702, %v1804_v32  ;;  %v1767_v45 = vpop.f32.mrb[31].mxu1  ;;  %v1808_v41 = vpop.f32.mrb[19].mxu0 }
 0xc03   : > { %v2499_v44 = vmul.f32 -1.702, %v1765_v35  ;;  %v2501_v46 = vmul.f32 -1.702, %v1806_v36 }
 0xc04   : > { %v1818_v47 = vmul.f32 1.442695, %v2498_v39  ;;  %v1822_v42 = vmul.f32 1.442695, %v2500_v40 }
 0xc05   : > { %v1820_v43 = vmul.f32 1.442695, %v2499_v44  ;;  %v1824_v48 = vmul.f32 1.442695, %v2501_v46 }
 0xc06   : > { %3024 = vpow2.f32 %v1818_v47 }
 0xc07   : > { %3026 = vpow2.f32 %v1822_v42 }
 0xc08   : > { %3028 = vpow2.f32 %v1820_v43 }
 0xc09   : > { %3030 = vpow2.f32 %v1824_v48 }
 0xc10   : > { %v3025_v49 = vpop.eup %3024 }
 0xc11   : > { %v3027_v50 = vpop.eup %3026  ;;  %v1826_v51 = vadd.f32 1.0, %v3025_v49 }
 0xc12   : > { %v3029_v52 = vpop.eup %3028  ;;  %v1828_v53 = vadd.f32 1.0, %v3027_v50 }
 0xc13   : > { %v3031_v54 = vpop.eup %3030  ;;  %3032 = vrcp.f32 %v1826_v51  ;;  %v1827_v55 = vadd.f32 1.0, %v3029_v52 }
 0xc14   : > { %3034 = vrcp.f32 %v1828_v53  ;;  %v1829_v3 = vadd.f32 1.0, %v3031_v54 }
 0xc15   : > { %3036 = vrcp.f32 %v1827_v55 }
 0xc16   : > { %3038 = vrcp.f32 %v1829_v3 }
 0xc1d   : > { %v3033_v56 = vpop.eup %3032 }
 0xc1e   : > { %v3035_v57 = vpop.eup %3034  ;;  %v1838_v59 = vmul.f32 %v3033_v56, %v1763_v30 }
 0xc1f   : > { %v3037_v58 = vpop.eup %3036  ;;  %v1840_v61 = vmul.f32 %v3035_v57, %v1804_v32 }
 0xc20   : > { %v3039_v60 = vpop.eup %3038  ;;  %v1839_v62 = vmul.f32 %v3037_v58, %v1765_v35  ;;  %v1842_v5 = vpack.c.bf16 %v1838_v59, %v1838_v59 }
 0xc21   : > { %v1841_v63 = vmul.f32 %v3039_v60, %v1806_v36  ;;  %v1844_v31 = vpack.c.bf16 %v1840_v61, %v1840_v61 }
 0xc22   : > { %v1843_v2 = vpack.c.bf16 %v1839_v62, %v1839_v62 }
 0xc23   : > { %v1845_v6 = vpack.c.bf16 %v1841_v63, %v1841_v63 }
 0xc24   : > { %2141 = vmatprep.mubr.bf16.mxu1 %v1843_v2 }
 0xc25   : > { %2181 = vmatprep.mubr.bf16.mxu0 %v1845_v6  ;;  %2142 = vmatmul.mubr.bf16.vlgmr.msra.gmra.mrb[32].mxu1 %v1842_v5 }
 0xc26   : > { %2182 = vmatmul.mubr.bf16.vlgmr.msra.gmra.mrb[20].mxu0 %v1844_v31 }
 0xcf8   : > { %v2589_v7 = vpop.f32.mrb[32].mxu1 }
 0xcf9   : > { %v2611_v8 = vpop.f32.mrb[20].mxu0  ;;  %v2590_v10 = vpop.f32.mrb[33].mxu1 }
 0xcfa   : > { %v2591_v25 = vadd.f32 %v2590_v10, %v2589_v7  ;;  %v2612_v11 = vpop.f32.mrb[21].mxu0  ;;  %v2592_v12 = vpop.f32.mrb[34].mxu1 }
 0xcfb   : > { %v2613_v0 = vadd.f32 %v2612_v11, %v2611_v8  ;;  %v2614_v13 = vpop.f32.mrb[22].mxu0  ;;  %v2593_v14 = vpop.f32.mrb[35].mxu1 }
 0xcfc   : > { %v2144_v15 = vadd.f32 %v2591_v25, %v2502_v9  ;;  %v2615_v16 = vpop.f32.mrb[23].mxu0 }
 0xcfe   : > { %v2184_v17 = vadd.f32 %v2613_v0, %v2144_v15 }
 0xd00   : > { %v2189_v18 = vadd.f32 %v2184_v17, %v4120_v4 }
 0xd02   : > { %2190 = vst [vmem:[%s613_s16] sm:$0xff] %v2189_v18 }
 0xd03   : > { %3419 = shalt.err (!%p3416_p7)
}
 0xd04   : > { %s3420_s17 = scalar_lea.hbm %s4138_s21, 128  ;;  %s3424_s19 = scalar_lea.hbm %s4245_s24, 256 }
 0xd05   : > { %p3421_p6 = scmp.ne.s32.totalorder %s4138_s21, %s3420_s17  ;;  %p3425_p13 = scmp.lt.u32.totalorder %s4138_s21, %s4245_s24 }
 0xd06   : > { %p3426_p1 = scmp.lt.u32.totalorder %s3424_s19, %s3420_s17  ;;  %p3428_p2 = scmp.lt.u32.totalorder %s3420_s17, %s4138_s21 }
 0xd07   : > { %p3422_p9 = pnand %p3421_p6, %p4246_p0 }
 0xd08   : > { %p3427_p3 = por %p3426_p1, %p3425_p13 }
 0xd09   : > { %p3423_p4 = pneg %p3422_p9 }
 0xd0a   : > { %p3429_p10 = por %p3428_p2, %p3427_p3 }
 0xd0c   : > { %p3430_p11 = pnand %p3429_p10, %p3423_p4 }
 0xd0e   : > { %3433 = shalt.err (!%p3430_p11)
}
 0xd0f   : > { %2755 = dma.vmem_to_hbm [thread:$0]  (%p4246_p0), %s4140_s25, 128, %s4138_s21, %s2192_s1  }
 0xd10 PF: > { %s4247_s3 = sld [smem:[#allocation32_spill]]  ;;  %p4248_p12 = scmp.ne.s32.totalorder %s4227_s23, 0 }
 0xd11   : > { %p4249_p8 = scmp.ge.s32.totalorder %s3496_s28, 2 }
 0xd13   : > { %p2799_p5 = pnand %p4249_p8, %p4248_p12 }
 0xd16   : > { %s2217_s15 = sand.u32 1, %s4247_s3  }
 0xd17   : > { %s2218_s30 = scalar_lea.sflag [#allocation4], %s2217_s15 }
 0xd18   : > { %3479 = dma.done.wait (!%p2799_p5), %s2218_s30, 128  }
 0xd19   : > { %3481 = vsyncadd (!%p2799_p5), %s2218_s30, 4294967168  ;;  %p32_p7 = scmp.ge.s32.totalorder %s3885_s18, 4   ;;  %s4250_s25 = smov %s3488_s26 }
 0xd1a   : > { %s4251_s26 = smov %s3492_s27  ;;  %s4252_s27 = smov %s3896_s29 }
 0xd1b   : > { %s4253_s28 = smov %s3885_s18  ;;  %34 = sbr.rel (!%p32_p7) target bundleno = 16 (0x10), region = 165 }
 0xd22   :  { %2223 = vsyncpa [#allocation3], 1 }
 0xd23   :  { %2225 = vsyncpa [#allocation3 + $0x1], 1 }
 0xd24   :  { %2226 = vsyncpa [#allocation6], 1 }
 0xd25   :  { %2227 = vsyncpa [#allocation9], 1 }
 0xd26   :  { %2228 = vsyncpa [#allocation12], 1 }
 0xd27   :  { %2229 = vsyncpa [#allocation15], 1 }
 0xd28   :  { %2230 = vsyncpa [#allocation18], 1 }
 0xd29   :  { %2231 = vsyncpa [#allocation21], 1 }
 0xd2a   :  { %2232 = vsyncpa [#allocation4], 1 }
 0xd2b   :  { %2234 = vsyncpa [#allocation4 + $0x1], 1 }

</bundles_post_ra>
